<compile_context>
chip_gen: v5e
topology: v5e:2x2
jax: 0.10.0
libtpu: 0.0.40
codegen_flags: <defaults>
</compile_context>

<pallas_src>
import math

import numpy as np
import jax
import jax.numpy as jnp
from jax.experimental import pallas as pl
from jax.experimental.pallas import tpu as pltpu

# ----- config (mirrors Actor.__init__ arguments, small synthetic sizes) -----
OBS_SHAPE = (4, 16, 16)      # (C, H, W)
NUM_FILTERS = 16             # num_filters
FEATURE_DIM = 32             # encoder_feature_dim
HIDDEN_DIM = 32              # hidden_dim
ACTION_DIM = 4               # action_shape[0]
LOG_STD_MIN = -10.0
LOG_STD_MAX = 2.0
BATCH = 2
KSIZE = 3
LN_EPS = 1e-5

H1 = (OBS_SHAPE[1] - KSIZE) // 2 + 1        # conv1 stride 2 -> 7
W1 = (OBS_SHAPE[2] - KSIZE) // 2 + 1
H2 = H1 - KSIZE + 1                          # conv2 stride 1 -> 5
W2 = W1 - KSIZE + 1
P1 = H1 * W1                                 # conv1 output pixels / image (49)
P2 = H2 * W2                                 # conv2 output pixels / image (25)
FLAT_DIM = NUM_FILTERS * P2                  # torch flatten size (400)
NTAPS = KSIZE * KSIZE
ROWS1 = W1 * H1 * BATCH                      # 98, conv1 rows = (ow1, oh1, n)
ROWS2 = W2 * H2 * BATCH                      # 50, conv2 rows = (ow2, oh2, n)
OUT_PAD = 128                                # lane-dense output slab width


# --------------------------- fused Pallas kernel -----------------------------

def actor_kernel(p1_ref, noise_ref, w1_ref, w2_ref, fc_ref,
                 t1w_ref, t2w_ref, w3_ref, bias_ref,
                 out_ref, c1_ref, g_ref, c2_ref):
    f32 = jnp.float32
    NB = BATCH
    RB = H1 * NB          # 14 rows per conv1 output column
    OB = H2 * NB          # 10 rows per conv2 output column

    # ---- small parameters from the packed (8,128) slab ----------------------
    b1   = bias_ref[0:1, 0:NUM_FILTERS]
    b2   = bias_ref[1:2, 0:NUM_FILTERS]
    bfc  = bias_ref[2:3, 0:FEATURE_DIM]
    ln_g = bias_ref[3:4, 0:FEATURE_DIM]
    ln_b = bias_ref[4:5, 0:FEATURE_DIM]
    t1b  = bias_ref[5:6, 0:HIDDEN_DIM]
    t2b  = bias_ref[6:7, 0:HIDDEN_DIM]
    b3   = bias_ref[7:8, 0:2 * ACTION_DIM]

    # ---- conv1 (im2col GEMM, 1/255 folded into w1) + ReLU --------------------
    # rows ordered (ow1, oh1, n) so conv2 taps below are contiguous row slices.
    c1_ref[...] = jnp.maximum(
        jnp.dot(p1_ref[...], w1_ref[...], preferred_element_type=f32) + b1, 0.0)

    # ---- conv2: static-slice tap gather + ONE K=144 matmul -------------------
    # gathered[(ow2, oh2, n), (kh, kw, c)] = c1[(ow2+kw, oh2+kh, n), c]
    for ow in range(W2):
        taps = []
        for kh in range(KSIZE):
            for kw in range(KSIZE):
                r0 = (ow + kw) * RB + kh * NB
                taps.append(c1_ref[r0:r0 + OB, :])               # (10, 16)
        g_ref[ow * OB:(ow + 1) * OB, :] = jnp.concatenate(taps, axis=1)

    c2_ref[...] = jnp.maximum(
        jnp.dot(g_ref[...], w2_ref[...], preferred_element_type=f32) + b2, 0.0)

    # ---- encoder fc: per-image flatten via lane concat + one matmul ----------
    # fc weight is pre-permuted offline to this (ow2, oh2, c) lane order.
    flat = jnp.concatenate(
        [c2_ref[p * NB:(p + 1) * NB, :] for p in range(P2)], axis=1)   # (2, 400)
    z = jnp.dot(flat, fc_ref[...], preferred_element_type=f32) + bfc   # (2, 32)

    # ---- LayerNorm + tanh -----------------------------------------------------
    mean = jnp.mean(z, axis=-1, keepdims=True)
    zc = z - mean
    var = jnp.mean(zc * zc, axis=-1, keepdims=True)
    z = jnp.tanh(zc * jax.lax.rsqrt(var + LN_EPS) * ln_g + ln_b)

    # ---- trunk ----------------------------------------------------------------
    h1 = jnp.maximum(
        jnp.dot(z, t1w_ref[...], preferred_element_type=f32) + t1b, 0.0)
    h2 = jnp.maximum(
        jnp.dot(h1, t2w_ref[...], preferred_element_type=f32) + t2b, 0.0)
    head = jnp.dot(h2, w3_ref[...], preferred_element_type=f32) + b3   # (2, 8)

    mu = head[:, 0:ACTION_DIM]
    ls = jnp.tanh(head[:, ACTION_DIM:2 * ACTION_DIM])
    log_std = LOG_STD_MIN + 0.5 * (LOG_STD_MAX - LOG_STD_MIN) * (ls + 1.0)
    std = jnp.exp(log_std)

    noise = noise_ref[...]
    pi = mu + noise * std

    # gaussian_logprob
    log_pi = jnp.sum(-0.5 * noise * noise - log_std, axis=-1, keepdims=True)
    log_pi = log_pi - 0.5 * math.log(2.0 * math.pi) * ACTION_DIM

    # squash
    mu_t = jnp.tanh(mu)
    pi_t = jnp.tanh(pi)
    log_pi = log_pi - jnp.sum(
        jnp.log(jnp.maximum(1.0 - pi_t * pi_t, 0.0) + 1e-6),
        axis=-1, keepdims=True)

    # ---- single lane-dense output slab, one unmasked store --------------------
    pad = jnp.zeros((NB, OUT_PAD - (3 * ACTION_DIM + 1)), f32)
    out_ref[...] = jnp.concatenate([mu_t, pi_t, log_std, log_pi, pad], axis=1)


def _full_block(shape):
    idx = (0,) * len(shape)
    return pl.BlockSpec(shape, lambda i, _idx=idx: _idx)


# ------------------------------ glue / params --------------------------------

def init_params(key):
    """Parameters in the original (torch-equivalent math) layout."""
    ks = jax.random.split(key, 6)
    s = 0.05
    return {
        "conv1_w": s * jax.random.normal(ks[0], (KSIZE, KSIZE, OBS_SHAPE[0], NUM_FILTERS), jnp.float32),
        "conv1_b": jnp.zeros((NUM_FILTERS,), jnp.float32),
        "conv2_w": s * jax.random.normal(ks[1], (KSIZE, KSIZE, NUM_FILTERS, NUM_FILTERS), jnp.float32),
        "conv2_b": jnp.zeros((NUM_FILTERS,), jnp.float32),
        "fc_w": s * jax.random.normal(ks[2], (FLAT_DIM, FEATURE_DIM), jnp.float32),
        "fc_b": jnp.zeros((FEATURE_DIM,), jnp.float32),
        "ln_g": jnp.ones((FEATURE_DIM,), jnp.float32),
        "ln_b": jnp.zeros((FEATURE_DIM,), jnp.float32),
        "t1_w": s * jax.random.normal(ks[3], (FEATURE_DIM, HIDDEN_DIM), jnp.float32),
        "t1_b": jnp.zeros((HIDDEN_DIM,), jnp.float32),
        "t2_w": s * jax.random.normal(ks[4], (HIDDEN_DIM, HIDDEN_DIM), jnp.float32),
        "t2_b": jnp.zeros((HIDDEN_DIM,), jnp.float32),
        "t3_w": s * jax.random.normal(ks[5], (HIDDEN_DIM, 2 * ACTION_DIM), jnp.float32),
        "t3_b": jnp.zeros((2 * ACTION_DIM,), jnp.float32),
    }


def pack_params(p):
    """One-time (outside jit) repack into kernel-ready layouts."""
    NF, F, A = NUM_FILTERS, FEATURE_DIM, ACTION_DIM

    # fc weight permuted so z = flat @ fc_perm matches the torch NCHW flatten,
    # with flat lane order (ow2, oh2, c):  fc_perm[(ow*H2+oh)*NF+c] = fc_w[c*P2+oh*W2+ow]
    fcw = np.asarray(p["fc_w"]).reshape(NF, H2, W2, F)          # [c, oh, ow, f]
    fc_perm = np.transpose(fcw, (2, 1, 0, 3)).reshape(P2 * NF, F)

    # all tiny bias / LN vectors packed into one (8,128) slab
    bias = np.zeros((8, OUT_PAD), np.float32)
    bias[0, :NF] = np.asarray(p["conv1_b"])
    bias[1, :NF] = np.asarray(p["conv2_b"])
    bias[2, :F] = np.asarray(p["fc_b"])
    bias[3, :F] = np.asarray(p["ln_g"])
    bias[4, :F] = np.asarray(p["ln_b"])
    bias[5, :HIDDEN_DIM] = np.asarray(p["t1_b"])
    bias[6, :HIDDEN_DIM] = np.asarray(p["t2_b"])
    bias[7, :2 * A] = np.asarray(p["t3_b"])

    return {
        # conv1 (1/255 folded into the weights), rows = (kh, kw, cin)
        "w1": p["conv1_w"].reshape(NTAPS * OBS_SHAPE[0], NF) / 255.0,
        # conv2 weights, rows = (kh, kw, c) matching the in-kernel tap concat
        "w2": p["conv2_w"].reshape(NTAPS * NF, NF),
        "fc": jnp.asarray(fc_perm, jnp.float32),
        "t1w": p["t1_w"],
        "t2w": p["t2_w"],
        "w3": p["t3_w"],                       # merged (HIDDEN, 2A) head
        "bias": jnp.asarray(bias, jnp.float32),
    }


def actor_forward(kp, obs_nchw, noise):
    """Pallas implementation of Actor.forward(obs, compute_pi=True, compute_log_pi=True)."""
    assert obs_nchw.shape[0] == BATCH, "kernel constants are baked for BATCH"

    # input-side glue: NCHW->NHWC + conv1 patch extraction (reads HBM input anyway).
    # Patch rows are ordered (ow1, oh1, n) so conv2 taps are contiguous row slices.
    x = jnp.transpose(obs_nchw, (0, 2, 3, 1)).astype(jnp.float32)
    cols = []
    for kh in range(KSIZE):
        for kw in range(KSIZE):
            cols.append(x[:, kh:kh + 2 * H1:2, kw:kw + 2 * W1:2, :])
    patches = jnp.concatenate(cols, axis=-1)                 # (N, H1, W1, 36)
    p1 = jnp.transpose(patches, (2, 1, 0, 3)).reshape(
        ROWS1, NTAPS * OBS_SHAPE[0])                         # (98, 36)

    args = (p1, noise, kp["w1"], kp["w2"], kp["fc"], kp["t1w"], kp["t2w"],
            kp["w3"], kp["bias"])

    # NOTE: at realistic batch sizes this would get a batch-row grid axis marked
    # "parallel" (v7x has 2 TCs); at BATCH=2 a single block is the right call.
    out = pl.pallas_call(
        actor_kernel,
        out_shape=jax.ShapeDtypeStruct((BATCH, OUT_PAD), jnp.float32),
        grid=(1,),
        in_specs=[_full_block(a.shape) for a in args],
        out_specs=_full_block((BATCH, OUT_PAD)),
        scratch_shapes=[
            pltpu.VMEM((ROWS1, NUM_FILTERS), jnp.float32),           # c1
            pltpu.VMEM((ROWS2, NTAPS * NUM_FILTERS), jnp.float32),   # gathered taps
            pltpu.VMEM((ROWS2, NUM_FILTERS), jnp.float32),           # c2
        ],
        compiler_params=pltpu.CompilerParams(dimension_semantics=("arbitrary",)),
    )(*args)

    mu = out[:, 0:ACTION_DIM]
    pi = out[:, ACTION_DIM:2 * ACTION_DIM]
    log_std = out[:, 2 * ACTION_DIM:3 * ACTION_DIM]
    log_pi = out[:, 3 * ACTION_DIM:3 * ACTION_DIM + 1]
    return mu, pi, log_pi, log_std


def reference_forward(params, obs_nchw, noise):
    """Pure-JAX reference (mirrors the PyTorch forward) for a sanity check."""
    hp = jax.lax.Precision.HIGHEST
    x = jnp.transpose(obs_nchw, (0, 2, 3, 1)).astype(jnp.float32) / 255.0
    dn = ("NHWC", "HWIO", "NHWC")
    c1 = jax.lax.conv_general_dilated(x, params["conv1_w"], (2, 2), "VALID",
                                      dimension_numbers=dn, precision=hp)
    c1 = jnp.maximum(c1 + params["conv1_b"], 0.0)
    c2 = jax.lax.conv_general_dilated(c1, params["conv2_w"], (1, 1), "VALID",
                                      dimension_numbers=dn, precision=hp)
    c2 = jnp.maximum(c2 + params["conv2_b"], 0.0)
    h = jnp.transpose(c2, (0, 3, 1, 2)).reshape(c2.shape[0], -1)
    z = jnp.dot(h, params["fc_w"], precision=hp) + params["fc_b"]
    mean = z.mean(-1, keepdims=True)
    var = ((z - mean) ** 2).mean(-1, keepdims=True)
    z = (z - mean) / jnp.sqrt(var + LN_EPS) * params["ln_g"] + params["ln_b"]
    z = jnp.tanh(z)
    h1 = jnp.maximum(jnp.dot(z, params["t1_w"], precision=hp) + params["t1_b"], 0.0)
    h2 = jnp.maximum(jnp.dot(h1, params["t2_w"], precision=hp) + params["t2_b"], 0.0)
    out = jnp.dot(h2, params["t3_w"], precision=hp) + params["t3_b"]
    mu, log_std = out[:, :ACTION_DIM], out[:, ACTION_DIM:]
    log_std = jnp.tanh(log_std)
    log_std = LOG_STD_MIN + 0.5 * (LOG_STD_MAX - LOG_STD_MIN) * (log_std + 1.0)
    std = jnp.exp(log_std)
    pi = mu + noise * std
    log_pi = jnp.sum(-0.5 * noise ** 2 - log_std, -1, keepdims=True) \
        - 0.5 * math.log(2.0 * math.pi) * ACTION_DIM
    mu, pi = jnp.tanh(mu), jnp.tanh(pi)
    log_pi = log_pi - jnp.sum(jnp.log(jnp.maximum(1.0 - pi ** 2, 0.0) + 1e-6),
                              -1, keepdims=True)
    return mu, pi, log_pi, log_std


if __name__ == "__main__":
    key = jax.random.PRNGKey(0)
    k_param, k_obs, k_noise = jax.random.split(key, 3)

    params = init_params(k_param)
    kernel_params = pack_params(params)     # one-time repack, outside jit

    obs = jax.random.uniform(k_obs, (BATCH,) + OBS_SHAPE, jnp.float32,
                             minval=0.0, maxval=255.0)
    # TODO(synk): torch.randn_like's RNG stream cannot be reproduced; an
    # equivalent standard-normal noise tensor is generated here and passed in.
    noise = jax.random.normal(k_noise, (BATCH, ACTION_DIM), jnp.float32)

    fwd = jax.jit(actor_forward)
    outs = fwd(kernel_params, obs, noise)
    outs = jax.block_until_ready(outs)

    refs = reference_forward(params, obs, noise)
    for o, r in zip(outs, refs):
        assert o.shape == r.shape and o.dtype == r.dtype
        assert jnp.max(jnp.abs(o - r)) < 1e-3

    print("KERNEL_OK")
</pallas_src>

<mosaic_0001>
module attributes {stable_mosaic.version = 11 : i64} {
  func.func @actor_kernel(%arg0: i32, %arg1: memref<98x36xf32, #tpu.memory_space<vmem>>, %arg2: memref<2x4xf32, #tpu.memory_space<vmem>>, %arg3: memref<36x16xf32, #tpu.memory_space<vmem>>, %arg4: memref<144x16xf32, #tpu.memory_space<vmem>>, %arg5: memref<400x32xf32, #tpu.memory_space<vmem>>, %arg6: memref<32x32xf32, #tpu.memory_space<vmem>>, %arg7: memref<32x32xf32, #tpu.memory_space<vmem>>, %arg8: memref<32x8xf32, #tpu.memory_space<vmem>>, %arg9: memref<8x128xf32, #tpu.memory_space<vmem>>, %arg10: memref<2x128xf32, #tpu.memory_space<vmem>>, %arg11: memref<98x16xf32, #tpu.memory_space<vmem>>, %arg12: memref<50x144xf32, #tpu.memory_space<vmem>>, %arg13: memref<50x16xf32, #tpu.memory_space<vmem>>) attributes {dimension_semantics = [#tpu.dimension_semantics<arbitrary>], iteration_bounds = array<i64: 1>, scalar_prefetch = 0 : i64, scratch_operands = 3 : i64, tpu.core_type = #tpu.core_type<tc>, window_params = [{pipeline_mode = #tpu.pipeline_mode<synchronous>, transform_indices = @transform_0, window_bounds = array<i64: 98, 36>}, {pipeline_mode = #tpu.pipeline_mode<synchronous>, transform_indices = @transform_1, window_bounds = array<i64: 2, 4>}, {pipeline_mode = #tpu.pipeline_mode<synchronous>, transform_indices = @transform_2, window_bounds = array<i64: 36, 16>}, {pipeline_mode = #tpu.pipeline_mode<synchronous>, transform_indices = @transform_3, window_bounds = array<i64: 144, 16>}, {pipeline_mode = #tpu.pipeline_mode<synchronous>, transform_indices = @transform_4, window_bounds = array<i64: 400, 32>}, {pipeline_mode = #tpu.pipeline_mode<synchronous>, transform_indices = @transform_5, window_bounds = array<i64: 32, 32>}, {pipeline_mode = #tpu.pipeline_mode<synchronous>, transform_indices = @transform_6, window_bounds = array<i64: 32, 32>}, {pipeline_mode = #tpu.pipeline_mode<synchronous>, transform_indices = @transform_7, window_bounds = array<i64: 32, 8>}, {pipeline_mode = #tpu.pipeline_mode<synchronous>, transform_indices = @transform_8, window_bounds = array<i64: 8, 128>}, {pipeline_mode = #tpu.pipeline_mode<synchronous>, transform_indices = @transform_9, window_bounds = array<i64: 2, 128>}]} {
    %c0 = arith.constant 0 : index
    %c0_0 = arith.constant 0 : index
    %0 = vector.load %arg9[%c0, %c0_0] : memref<8x128xf32, #tpu.memory_space<vmem>>, vector<1x16xf32>
    %c1 = arith.constant 1 : index
    %c0_1 = arith.constant 0 : index
    %1 = vector.load %arg9[%c1, %c0_1] : memref<8x128xf32, #tpu.memory_space<vmem>>, vector<1x16xf32>
    %c2 = arith.constant 2 : index
    %c0_2 = arith.constant 0 : index
    %2 = vector.load %arg9[%c2, %c0_2] : memref<8x128xf32, #tpu.memory_space<vmem>>, vector<1x32xf32>
    %c3 = arith.constant 3 : index
    %c0_3 = arith.constant 0 : index
    %3 = vector.load %arg9[%c3, %c0_3] : memref<8x128xf32, #tpu.memory_space<vmem>>, vector<1x32xf32>
    %c4 = arith.constant 4 : index
    %c0_4 = arith.constant 0 : index
    %4 = vector.load %arg9[%c4, %c0_4] : memref<8x128xf32, #tpu.memory_space<vmem>>, vector<1x32xf32>
    %c5 = arith.constant 5 : index
    %c0_5 = arith.constant 0 : index
    %5 = vector.load %arg9[%c5, %c0_5] : memref<8x128xf32, #tpu.memory_space<vmem>>, vector<1x32xf32>
    %c6 = arith.constant 6 : index
    %c0_6 = arith.constant 0 : index
    %6 = vector.load %arg9[%c6, %c0_6] : memref<8x128xf32, #tpu.memory_space<vmem>>, vector<1x32xf32>
    %c7 = arith.constant 7 : index
    %c0_7 = arith.constant 0 : index
    %7 = vector.load %arg9[%c7, %c0_7] : memref<8x128xf32, #tpu.memory_space<vmem>>, vector<1x8xf32>
    %c0_8 = arith.constant 0 : index
    %c0_9 = arith.constant 0 : index
    %8 = vector.load %arg1[%c0_8, %c0_9] : memref<98x36xf32, #tpu.memory_space<vmem>>, vector<98x36xf32>
    %c0_10 = arith.constant 0 : index
    %c0_11 = arith.constant 0 : index
    %9 = vector.load %arg3[%c0_10, %c0_11] : memref<36x16xf32, #tpu.memory_space<vmem>>, vector<36x16xf32>
    %cst = arith.constant dense<0.000000e+00> : vector<98x16xf32>
    %10 = tpu.matmul %8, %9, %cst {dimension_numbers = #tpu.dot_dimension_numbers<[1], [0], [0], [1], [0, 0, 1, 1], [], []>} : vector<98x36xf32>, vector<36x16xf32>, vector<98x16xf32> -> vector<98x16xf32>
    %11 = vector.broadcast %0 : vector<1x16xf32> to vector<98x16xf32>
    %12 = arith.addf %10, %11 : vector<98x16xf32>
    %cst_12 = arith.constant 0.000000e+00 : f32
    %13 = vector.broadcast %cst_12 : f32 to vector<98x16xf32>
    %14 = arith.maximumf %12, %13 : vector<98x16xf32>
    %c0_13 = arith.constant 0 : index
    %c0_14 = arith.constant 0 : index
    %15 = vector.load %arg11[%c0_13, %c0_14] : memref<98x16xf32, #tpu.memory_space<vmem>>, vector<98x16xf32>
    tpu.vector_store %arg11[%c0_13, %c0_14], %14 {strides = array<i32>} : memref<98x16xf32, #tpu.memory_space<vmem>>, vector<98x16xf32>,
    %c0_15 = arith.constant 0 : index
    %c0_16 = arith.constant 0 : index
    %16 = vector.load %arg11[%c0_15, %c0_16] : memref<98x16xf32, #tpu.memory_space<vmem>>, vector<10x16xf32>
    %c14 = arith.constant 14 : index
    %c0_17 = arith.constant 0 : index
    %17 = vector.load %arg11[%c14, %c0_17] : memref<98x16xf32, #tpu.memory_space<vmem>>, vector<10x16xf32>
    %c28 = arith.constant 28 : index
    %c0_18 = arith.constant 0 : index
    %18 = vector.load %arg11[%c28, %c0_18] : memref<98x16xf32, #tpu.memory_space<vmem>>, vector<10x16xf32>
    %c2_19 = arith.constant 2 : index
    %c0_20 = arith.constant 0 : index
    %19 = vector.load %arg11[%c2_19, %c0_20] : memref<98x16xf32, #tpu.memory_space<vmem>>, vector<10x16xf32>
    %c16 = arith.constant 16 : index
    %c0_21 = arith.constant 0 : index
    %20 = vector.load %arg11[%c16, %c0_21] : memref<98x16xf32, #tpu.memory_space<vmem>>, vector<10x16xf32>
    %c30 = arith.constant 30 : index
    %c0_22 = arith.constant 0 : index
    %21 = vector.load %arg11[%c30, %c0_22] : memref<98x16xf32, #tpu.memory_space<vmem>>, vector<10x16xf32>
    %c4_23 = arith.constant 4 : index
    %c0_24 = arith.constant 0 : index
    %22 = vector.load %arg11[%c4_23, %c0_24] : memref<98x16xf32, #tpu.memory_space<vmem>>, vector<10x16xf32>
    %c18 = arith.constant 18 : index
    %c0_25 = arith.constant 0 : index
    %23 = vector.load %arg11[%c18, %c0_25] : memref<98x16xf32, #tpu.memory_space<vmem>>, vector<10x16xf32>
    %c32 = arith.constant 32 : index
    %c0_26 = arith.constant 0 : index
    %24 = vector.load %arg11[%c32, %c0_26] : memref<98x16xf32, #tpu.memory_space<vmem>>, vector<10x16xf32>
    %25 = tpu.concatenate %16, %17, %18, %19, %20, %21, %22, %23, %24 in 1 : vector<10x16xf32>, vector<10x16xf32>, vector<10x16xf32>, vector<10x16xf32>, vector<10x16xf32>, vector<10x16xf32>, vector<10x16xf32>, vector<10x16xf32>, vector<10x16xf32> -> vector<10x144xf32>
    %c0_27 = arith.constant 0 : index
    %c0_28 = arith.constant 0 : index
    %26 = vector.load %arg12[%c0_27, %c0_28] : memref<50x144xf32, #tpu.memory_space<vmem>>, vector<10x144xf32>
    tpu.vector_store %arg12[%c0_27, %c0_28], %25 {strides = array<i32>} : memref<50x144xf32, #tpu.memory_space<vmem>>, vector<10x144xf32>,
    %c14_29 = arith.constant 14 : index
    %c0_30 = arith.constant 0 : index
    %27 = vector.load %arg11[%c14_29, %c0_30] : memref<98x16xf32, #tpu.memory_space<vmem>>, vector<10x16xf32>
    %c28_31 = arith.constant 28 : index
    %c0_32 = arith.constant 0 : index
    %28 = vector.load %arg11[%c28_31, %c0_32] : memref<98x16xf32, #tpu.memory_space<vmem>>, vector<10x16xf32>
    %c42 = arith.constant 42 : index
    %c0_33 = arith.constant 0 : index
    %29 = vector.load %arg11[%c42, %c0_33] : memref<98x16xf32, #tpu.memory_space<vmem>>, vector<10x16xf32>
    %c16_34 = arith.constant 16 : index
    %c0_35 = arith.constant 0 : index
    %30 = vector.load %arg11[%c16_34, %c0_35] : memref<98x16xf32, #tpu.memory_space<vmem>>, vector<10x16xf32>
    %c30_36 = arith.constant 30 : index
    %c0_37 = arith.constant 0 : index
    %31 = vector.load %arg11[%c30_36, %c0_37] : memref<98x16xf32, #tpu.memory_space<vmem>>, vector<10x16xf32>
    %c44 = arith.constant 44 : index
    %c0_38 = arith.constant 0 : index
    %32 = vector.load %arg11[%c44, %c0_38] : memref<98x16xf32, #tpu.memory_space<vmem>>, vector<10x16xf32>
    %c18_39 = arith.constant 18 : index
    %c0_40 = arith.constant 0 : index
    %33 = vector.load %arg11[%c18_39, %c0_40] : memref<98x16xf32, #tpu.memory_space<vmem>>, vector<10x16xf32>
    %c32_41 = arith.constant 32 : index
    %c0_42 = arith.constant 0 : index
    %34 = vector.load %arg11[%c32_41, %c0_42] : memref<98x16xf32, #tpu.memory_space<vmem>>, vector<10x16xf32>
    %c46 = arith.constant 46 : index
    %c0_43 = arith.constant 0 : index
    %35 = vector.load %arg11[%c46, %c0_43] : memref<98x16xf32, #tpu.memory_space<vmem>>, vector<10x16xf32>
    %36 = tpu.concatenate %27, %28, %29, %30, %31, %32, %33, %34, %35 in 1 : vector<10x16xf32>, vector<10x16xf32>, vector<10x16xf32>, vector<10x16xf32>, vector<10x16xf32>, vector<10x16xf32>, vector<10x16xf32>, vector<10x16xf32>, vector<10x16xf32> -> vector<10x144xf32>
    %c10 = arith.constant 10 : index
    %c0_44 = arith.constant 0 : index
    %37 = vector.load %arg12[%c10, %c0_44] : memref<50x144xf32, #tpu.memory_space<vmem>>, vector<10x144xf32>
    tpu.vector_store %arg12[%c10, %c0_44], %36 {strides = array<i32>} : memref<50x144xf32, #tpu.memory_space<vmem>>, vector<10x144xf32>,
    %c28_45 = arith.constant 28 : index
    %c0_46 = arith.constant 0 : index
    %38 = vector.load %arg11[%c28_45, %c0_46] : memref<98x16xf32, #tpu.memory_space<vmem>>, vector<10x16xf32>
    %c42_47 = arith.constant 42 : index
    %c0_48 = arith.constant 0 : index
    %39 = vector.load %arg11[%c42_47, %c0_48] : memref<98x16xf32, #tpu.memory_space<vmem>>, vector<10x16xf32>
    %c56 = arith.constant 56 : index
    %c0_49 = arith.constant 0 : index
    %40 = vector.load %arg11[%c56, %c0_49] : memref<98x16xf32, #tpu.memory_space<vmem>>, vector<10x16xf32>
    %c30_50 = arith.constant 30 : index
    %c0_51 = arith.constant 0 : index
    %41 = vector.load %arg11[%c30_50, %c0_51] : memref<98x16xf32, #tpu.memory_space<vmem>>, vector<10x16xf32>
    %c44_52 = arith.constant 44 : index
    %c0_53 = arith.constant 0 : index
    %42 = vector.load %arg11[%c44_52, %c0_53] : memref<98x16xf32, #tpu.memory_space<vmem>>, vector<10x16xf32>
    %c58 = arith.constant 58 : index
    %c0_54 = arith.constant 0 : index
    %43 = vector.load %arg11[%c58, %c0_54] : memref<98x16xf32, #tpu.memory_space<vmem>>, vector<10x16xf32>
    %c32_55 = arith.constant 32 : index
    %c0_56 = arith.constant 0 : index
    %44 = vector.load %arg11[%c32_55, %c0_56] : memref<98x16xf32, #tpu.memory_space<vmem>>, vector<10x16xf32>
    %c46_57 = arith.constant 46 : index
    %c0_58 = arith.constant 0 : index
    %45 = vector.load %arg11[%c46_57, %c0_58] : memref<98x16xf32, #tpu.memory_space<vmem>>, vector<10x16xf32>
    %c60 = arith.constant 60 : index
    %c0_59 = arith.constant 0 : index
    %46 = vector.load %arg11[%c60, %c0_59] : memref<98x16xf32, #tpu.memory_space<vmem>>, vector<10x16xf32>
    %47 = tpu.concatenate %38, %39, %40, %41, %42, %43, %44, %45, %46 in 1 : vector<10x16xf32>, vector<10x16xf32>, vector<10x16xf32>, vector<10x16xf32>, vector<10x16xf32>, vector<10x16xf32>, vector<10x16xf32>, vector<10x16xf32>, vector<10x16xf32> -> vector<10x144xf32>
    %c20 = arith.constant 20 : index
    %c0_60 = arith.constant 0 : index
    %48 = vector.load %arg12[%c20, %c0_60] : memref<50x144xf32, #tpu.memory_space<vmem>>, vector<10x144xf32>
    tpu.vector_store %arg12[%c20, %c0_60], %47 {strides = array<i32>} : memref<50x144xf32, #tpu.memory_space<vmem>>, vector<10x144xf32>,
    %c42_61 = arith.constant 42 : index
    %c0_62 = arith.constant 0 : index
    %49 = vector.load %arg11[%c42_61, %c0_62] : memref<98x16xf32, #tpu.memory_space<vmem>>, vector<10x16xf32>
    %c56_63 = arith.constant 56 : index
    %c0_64 = arith.constant 0 : index
    %50 = vector.load %arg11[%c56_63, %c0_64] : memref<98x16xf32, #tpu.memory_space<vmem>>, vector<10x16xf32>
    %c70 = arith.constant 70 : index
    %c0_65 = arith.constant 0 : index
    %51 = vector.load %arg11[%c70, %c0_65] : memref<98x16xf32, #tpu.memory_space<vmem>>, vector<10x16xf32>
    %c44_66 = arith.constant 44 : index
    %c0_67 = arith.constant 0 : index
    %52 = vector.load %arg11[%c44_66, %c0_67] : memref<98x16xf32, #tpu.memory_space<vmem>>, vector<10x16xf32>
    %c58_68 = arith.constant 58 : index
    %c0_69 = arith.constant 0 : index
    %53 = vector.load %arg11[%c58_68, %c0_69] : memref<98x16xf32, #tpu.memory_space<vmem>>, vector<10x16xf32>
    %c72 = arith.constant 72 : index
    %c0_70 = arith.constant 0 : index
    %54 = vector.load %arg11[%c72, %c0_70] : memref<98x16xf32, #tpu.memory_space<vmem>>, vector<10x16xf32>
    %c46_71 = arith.constant 46 : index
    %c0_72 = arith.constant 0 : index
    %55 = vector.load %arg11[%c46_71, %c0_72] : memref<98x16xf32, #tpu.memory_space<vmem>>, vector<10x16xf32>
    %c60_73 = arith.constant 60 : index
    %c0_74 = arith.constant 0 : index
    %56 = vector.load %arg11[%c60_73, %c0_74] : memref<98x16xf32, #tpu.memory_space<vmem>>, vector<10x16xf32>
    %c74 = arith.constant 74 : index
    %c0_75 = arith.constant 0 : index
    %57 = vector.load %arg11[%c74, %c0_75] : memref<98x16xf32, #tpu.memory_space<vmem>>, vector<10x16xf32>
    %58 = tpu.concatenate %49, %50, %51, %52, %53, %54, %55, %56, %57 in 1 : vector<10x16xf32>, vector<10x16xf32>, vector<10x16xf32>, vector<10x16xf32>, vector<10x16xf32>, vector<10x16xf32>, vector<10x16xf32>, vector<10x16xf32>, vector<10x16xf32> -> vector<10x144xf32>
    %c30_76 = arith.constant 30 : index
    %c0_77 = arith.constant 0 : index
    %59 = vector.load %arg12[%c30_76, %c0_77] : memref<50x144xf32, #tpu.memory_space<vmem>>, vector<10x144xf32>
    tpu.vector_store %arg12[%c30_76, %c0_77], %58 {strides = array<i32>} : memref<50x144xf32, #tpu.memory_space<vmem>>, vector<10x144xf32>,
    %c56_78 = arith.constant 56 : index
    %c0_79 = arith.constant 0 : index
    %60 = vector.load %arg11[%c56_78, %c0_79] : memref<98x16xf32, #tpu.memory_space<vmem>>, vector<10x16xf32>
    %c70_80 = arith.constant 70 : index
    %c0_81 = arith.constant 0 : index
    %61 = vector.load %arg11[%c70_80, %c0_81] : memref<98x16xf32, #tpu.memory_space<vmem>>, vector<10x16xf32>
    %c84 = arith.constant 84 : index
    %c0_82 = arith.constant 0 : index
    %62 = vector.load %arg11[%c84, %c0_82] : memref<98x16xf32, #tpu.memory_space<vmem>>, vector<10x16xf32>
    %c58_83 = arith.constant 58 : index
    %c0_84 = arith.constant 0 : index
    %63 = vector.load %arg11[%c58_83, %c0_84] : memref<98x16xf32, #tpu.memory_space<vmem>>, vector<10x16xf32>
    %c72_85 = arith.constant 72 : index
    %c0_86 = arith.constant 0 : index
    %64 = vector.load %arg11[%c72_85, %c0_86] : memref<98x16xf32, #tpu.memory_space<vmem>>, vector<10x16xf32>
    %c86 = arith.constant 86 : index
    %c0_87 = arith.constant 0 : index
    %65 = vector.load %arg11[%c86, %c0_87] : memref<98x16xf32, #tpu.memory_space<vmem>>, vector<10x16xf32>
    %c60_88 = arith.constant 60 : index
    %c0_89 = arith.constant 0 : index
    %66 = vector.load %arg11[%c60_88, %c0_89] : memref<98x16xf32, #tpu.memory_space<vmem>>, vector<10x16xf32>
    %c74_90 = arith.constant 74 : index
    %c0_91 = arith.constant 0 : index
    %67 = vector.load %arg11[%c74_90, %c0_91] : memref<98x16xf32, #tpu.memory_space<vmem>>, vector<10x16xf32>
    %c88 = arith.constant 88 : index
    %c0_92 = arith.constant 0 : index
    %68 = vector.load %arg11[%c88, %c0_92] : memref<98x16xf32, #tpu.memory_space<vmem>>, vector<10x16xf32>
    %69 = tpu.concatenate %60, %61, %62, %63, %64, %65, %66, %67, %68 in 1 : vector<10x16xf32>, vector<10x16xf32>, vector<10x16xf32>, vector<10x16xf32>, vector<10x16xf32>, vector<10x16xf32>, vector<10x16xf32>, vector<10x16xf32>, vector<10x16xf32> -> vector<10x144xf32>
    %c40 = arith.constant 40 : index
    %c0_93 = arith.constant 0 : index
    %70 = vector.load %arg12[%c40, %c0_93] : memref<50x144xf32, #tpu.memory_space<vmem>>, vector<10x144xf32>
    tpu.vector_store %arg12[%c40, %c0_93], %69 {strides = array<i32>} : memref<50x144xf32, #tpu.memory_space<vmem>>, vector<10x144xf32>,
    %c0_94 = arith.constant 0 : index
    %c0_95 = arith.constant 0 : index
    %71 = vector.load %arg12[%c0_94, %c0_95] : memref<50x144xf32, #tpu.memory_space<vmem>>, vector<50x144xf32>
    %c0_96 = arith.constant 0 : index
    %c0_97 = arith.constant 0 : index
    %72 = vector.load %arg4[%c0_96, %c0_97] : memref<144x16xf32, #tpu.memory_space<vmem>>, vector<144x16xf32>
    %cst_98 = arith.constant dense<0.000000e+00> : vector<50x16xf32>
    %73 = tpu.matmul %71, %72, %cst_98 {dimension_numbers = #tpu.dot_dimension_numbers<[1], [0], [0], [1], [0, 0, 1, 1], [], []>} : vector<50x144xf32>, vector<144x16xf32>, vector<50x16xf32> -> vector<50x16xf32>
    %74 = vector.broadcast %1 : vector<1x16xf32> to vector<50x16xf32>
    %75 = arith.addf %73, %74 : vector<50x16xf32>
    %cst_99 = arith.constant 0.000000e+00 : f32
    %76 = vector.broadcast %cst_99 : f32 to vector<50x16xf32>
    %77 = arith.maximumf %75, %76 : vector<50x16xf32>
    %c0_100 = arith.constant 0 : index
    %c0_101 = arith.constant 0 : index
    %78 = vector.load %arg13[%c0_100, %c0_101] : memref<50x16xf32, #tpu.memory_space<vmem>>, vector<50x16xf32>
    tpu.vector_store %arg13[%c0_100, %c0_101], %77 {strides = array<i32>} : memref<50x16xf32, #tpu.memory_space<vmem>>, vector<50x16xf32>,
    %c0_102 = arith.constant 0 : index
    %c0_103 = arith.constant 0 : index
    %79 = vector.load %arg13[%c0_102, %c0_103] : memref<50x16xf32, #tpu.memory_space<vmem>>, vector<2x16xf32>
    %c2_104 = arith.constant 2 : index
    %c0_105 = arith.constant 0 : index
    %80 = vector.load %arg13[%c2_104, %c0_105] : memref<50x16xf32, #tpu.memory_space<vmem>>, vector<2x16xf32>
    %c4_106 = arith.constant 4 : index
    %c0_107 = arith.constant 0 : index
    %81 = vector.load %arg13[%c4_106, %c0_107] : memref<50x16xf32, #tpu.memory_space<vmem>>, vector<2x16xf32>
    %c6_108 = arith.constant 6 : index
    %c0_109 = arith.constant 0 : index
    %82 = vector.load %arg13[%c6_108, %c0_109] : memref<50x16xf32, #tpu.memory_space<vmem>>, vector<2x16xf32>
    %c8 = arith.constant 8 : index
    %c0_110 = arith.constant 0 : index
    %83 = vector.load %arg13[%c8, %c0_110] : memref<50x16xf32, #tpu.memory_space<vmem>>, vector<2x16xf32>
    %c10_111 = arith.constant 10 : index
    %c0_112 = arith.constant 0 : index
    %84 = vector.load %arg13[%c10_111, %c0_112] : memref<50x16xf32, #tpu.memory_space<vmem>>, vector<2x16xf32>
    %c12 = arith.constant 12 : index
    %c0_113 = arith.constant 0 : index
    %85 = vector.load %arg13[%c12, %c0_113] : memref<50x16xf32, #tpu.memory_space<vmem>>, vector<2x16xf32>
    %c14_114 = arith.constant 14 : index
    %c0_115 = arith.constant 0 : index
    %86 = vector.load %arg13[%c14_114, %c0_115] : memref<50x16xf32, #tpu.memory_space<vmem>>, vector<2x16xf32>
    %c16_116 = arith.constant 16 : index
    %c0_117 = arith.constant 0 : index
    %87 = vector.load %arg13[%c16_116, %c0_117] : memref<50x16xf32, #tpu.memory_space<vmem>>, vector<2x16xf32>
    %c18_118 = arith.constant 18 : index
    %c0_119 = arith.constant 0 : index
    %88 = vector.load %arg13[%c18_118, %c0_119] : memref<50x16xf32, #tpu.memory_space<vmem>>, vector<2x16xf32>
    %c20_120 = arith.constant 20 : index
    %c0_121 = arith.constant 0 : index
    %89 = vector.load %arg13[%c20_120, %c0_121] : memref<50x16xf32, #tpu.memory_space<vmem>>, vector<2x16xf32>
    %c22 = arith.constant 22 : index
    %c0_122 = arith.constant 0 : index
    %90 = vector.load %arg13[%c22, %c0_122] : memref<50x16xf32, #tpu.memory_space<vmem>>, vector<2x16xf32>
    %c24 = arith.constant 24 : index
    %c0_123 = arith.constant 0 : index
    %91 = vector.load %arg13[%c24, %c0_123] : memref<50x16xf32, #tpu.memory_space<vmem>>, vector<2x16xf32>
    %c26 = arith.constant 26 : index
    %c0_124 = arith.constant 0 : index
    %92 = vector.load %arg13[%c26, %c0_124] : memref<50x16xf32, #tpu.memory_space<vmem>>, vector<2x16xf32>
    %c28_125 = arith.constant 28 : index
    %c0_126 = arith.constant 0 : index
    %93 = vector.load %arg13[%c28_125, %c0_126] : memref<50x16xf32, #tpu.memory_space<vmem>>, vector<2x16xf32>
    %c30_127 = arith.constant 30 : index
    %c0_128 = arith.constant 0 : index
    %94 = vector.load %arg13[%c30_127, %c0_128] : memref<50x16xf32, #tpu.memory_space<vmem>>, vector<2x16xf32>
    %c32_129 = arith.constant 32 : index
    %c0_130 = arith.constant 0 : index
    %95 = vector.load %arg13[%c32_129, %c0_130] : memref<50x16xf32, #tpu.memory_space<vmem>>, vector<2x16xf32>
    %c34 = arith.constant 34 : index
    %c0_131 = arith.constant 0 : index
    %96 = vector.load %arg13[%c34, %c0_131] : memref<50x16xf32, #tpu.memory_space<vmem>>, vector<2x16xf32>
    %c36 = arith.constant 36 : index
    %c0_132 = arith.constant 0 : index
    %97 = vector.load %arg13[%c36, %c0_132] : memref<50x16xf32, #tpu.memory_space<vmem>>, vector<2x16xf32>
    %c38 = arith.constant 38 : index
    %c0_133 = arith.constant 0 : index
    %98 = vector.load %arg13[%c38, %c0_133] : memref<50x16xf32, #tpu.memory_space<vmem>>, vector<2x16xf32>
    %c40_134 = arith.constant 40 : index
    %c0_135 = arith.constant 0 : index
    %99 = vector.load %arg13[%c40_134, %c0_135] : memref<50x16xf32, #tpu.memory_space<vmem>>, vector<2x16xf32>
    %c42_136 = arith.constant 42 : index
    %c0_137 = arith.constant 0 : index
    %100 = vector.load %arg13[%c42_136, %c0_137] : memref<50x16xf32, #tpu.memory_space<vmem>>, vector<2x16xf32>
    %c44_138 = arith.constant 44 : index
    %c0_139 = arith.constant 0 : index
    %101 = vector.load %arg13[%c44_138, %c0_139] : memref<50x16xf32, #tpu.memory_space<vmem>>, vector<2x16xf32>
    %c46_140 = arith.constant 46 : index
    %c0_141 = arith.constant 0 : index
    %102 = vector.load %arg13[%c46_140, %c0_141] : memref<50x16xf32, #tpu.memory_space<vmem>>, vector<2x16xf32>
    %c48 = arith.constant 48 : index
    %c0_142 = arith.constant 0 : index
    %103 = vector.load %arg13[%c48, %c0_142] : memref<50x16xf32, #tpu.memory_space<vmem>>, vector<2x16xf32>
    %104 = tpu.concatenate %79, %80, %81, %82, %83, %84, %85, %86, %87, %88, %89, %90, %91, %92, %93, %94 in 1 : vector<2x16xf32>, vector<2x16xf32>, vector<2x16xf32>, vector<2x16xf32>, vector<2x16xf32>, vector<2x16xf32>, vector<2x16xf32>, vector<2x16xf32>, vector<2x16xf32>, vector<2x16xf32>, vector<2x16xf32>, vector<2x16xf32>, vector<2x16xf32>, vector<2x16xf32>, vector<2x16xf32>, vector<2x16xf32> -> vector<2x256xf32>
    %105 = tpu.concatenate %95, %96, %97, %98, %99, %100, %101, %102, %103 in 1 : vector<2x16xf32>, vector<2x16xf32>, vector<2x16xf32>, vector<2x16xf32>, vector<2x16xf32>, vector<2x16xf32>, vector<2x16xf32>, vector<2x16xf32>, vector<2x16xf32> -> vector<2x144xf32>
    %106 = tpu.concatenate %104, %105 in 1 : vector<2x256xf32>, vector<2x144xf32> -> vector<2x400xf32>
    %c0_143 = arith.constant 0 : index
    %c0_144 = arith.constant 0 : index
    %107 = vector.load %arg5[%c0_143, %c0_144] : memref<400x32xf32, #tpu.memory_space<vmem>>, vector<400x32xf32>
    %cst_145 = arith.constant dense<0.000000e+00> : vector<2x32xf32>
    %108 = tpu.matmul %106, %107, %cst_145 {dimension_numbers = #tpu.dot_dimension_numbers<[1], [0], [0], [1], [0, 0, 1, 1], [], []>} : vector<2x400xf32>, vector<400x32xf32>, vector<2x32xf32> -> vector<2x32xf32>
    %109 = vector.broadcast %2 : vector<1x32xf32> to vector<2x32xf32>
    %110 = arith.addf %108, %109 : vector<2x32xf32>
    %cst_146 = arith.constant dense<0.000000e+00> : vector<2xf32>
    %111 = vector.multi_reduction <add>, %110, %cst_146 [1] : vector<2x32xf32> to vector<2xf32>
    %112 = vector.shape_cast %111 : vector<2xf32> to vector<2x1xf32>
    %cst_147 = arith.constant 3.200000e+01 : f32
    %113 = vector.broadcast %cst_147 : f32 to vector<2x1xf32>
    %114 = arith.divf %112, %113 : vector<2x1xf32>
    %115 = vector.broadcast %114 : vector<2x1xf32> to vector<2x32xf32>
    %116 = arith.subf %110, %115 : vector<2x32xf32>
    %117 = arith.mulf %116, %116 : vector<2x32xf32>
    %cst_148 = arith.constant dense<0.000000e+00> : vector<2xf32>
    %118 = vector.multi_reduction <add>, %117, %cst_148 [1] : vector<2x32xf32> to vector<2xf32>
    %119 = vector.shape_cast %118 : vector<2xf32> to vector<2x1xf32>
    %cst_149 = arith.constant 3.200000e+01 : f32
    %120 = vector.broadcast %cst_149 : f32 to vector<2x1xf32>
    %121 = arith.divf %119, %120 : vector<2x1xf32>
    %cst_150 = arith.constant 9.99999974E-6 : f32
    %122 = vector.broadcast %cst_150 : f32 to vector<2x1xf32>
    %123 = arith.addf %121, %122 : vector<2x1xf32>
    %124 = math.rsqrt %123 : vector<2x1xf32>
    %125 = vector.broadcast %124 : vector<2x1xf32> to vector<2x32xf32>
    %126 = arith.mulf %116, %125 : vector<2x32xf32>
    %127 = vector.broadcast %3 : vector<1x32xf32> to vector<2x32xf32>
    %128 = arith.mulf %126, %127 : vector<2x32xf32>
    %129 = vector.broadcast %4 : vector<1x32xf32> to vector<2x32xf32>
    %130 = arith.addf %128, %129 : vector<2x32xf32>
    %131 = math.tanh %130 : vector<2x32xf32>
    %c0_151 = arith.constant 0 : index
    %c0_152 = arith.constant 0 : index
    %132 = vector.load %arg6[%c0_151, %c0_152] : memref<32x32xf32, #tpu.memory_space<vmem>>, vector<32x32xf32>
    %cst_153 = arith.constant dense<0.000000e+00> : vector<2x32xf32>
    %133 = tpu.matmul %131, %132, %cst_153 {dimension_numbers = #tpu.dot_dimension_numbers<[1], [0], [0], [1], [0, 0, 1, 1], [], []>} : vector<2x32xf32>, vector<32x32xf32>, vector<2x32xf32> -> vector<2x32xf32>
    %134 = vector.broadcast %5 : vector<1x32xf32> to vector<2x32xf32>
    %135 = arith.addf %133, %134 : vector<2x32xf32>
    %cst_154 = arith.constant 0.000000e+00 : f32
    %136 = vector.broadcast %cst_154 : f32 to vector<2x32xf32>
    %137 = arith.maximumf %135, %136 : vector<2x32xf32>
    %c0_155 = arith.constant 0 : index
    %c0_156 = arith.constant 0 : index
    %138 = vector.load %arg7[%c0_155, %c0_156] : memref<32x32xf32, #tpu.memory_space<vmem>>, vector<32x32xf32>
    %cst_157 = arith.constant dense<0.000000e+00> : vector<2x32xf32>
    %139 = tpu.matmul %137, %138, %cst_157 {dimension_numbers = #tpu.dot_dimension_numbers<[1], [0], [0], [1], [0, 0, 1, 1], [], []>} : vector<2x32xf32>, vector<32x32xf32>, vector<2x32xf32> -> vector<2x32xf32>
    %140 = vector.broadcast %6 : vector<1x32xf32> to vector<2x32xf32>
    %141 = arith.addf %139, %140 : vector<2x32xf32>
    %cst_158 = arith.constant 0.000000e+00 : f32
    %142 = vector.broadcast %cst_158 : f32 to vector<2x32xf32>
    %143 = arith.maximumf %141, %142 : vector<2x32xf32>
    %c0_159 = arith.constant 0 : index
    %c0_160 = arith.constant 0 : index
    %144 = vector.load %arg8[%c0_159, %c0_160] : memref<32x8xf32, #tpu.memory_space<vmem>>, vector<32x8xf32>
    %cst_161 = arith.constant dense<0.000000e+00> : vector<2x8xf32>
    %145 = tpu.matmul %143, %144, %cst_161 {dimension_numbers = #tpu.dot_dimension_numbers<[1], [0], [0], [1], [0, 0, 1, 1], [], []>} : vector<2x32xf32>, vector<32x8xf32>, vector<2x8xf32> -> vector<2x8xf32>
    %146 = vector.broadcast %7 : vector<1x8xf32> to vector<2x8xf32>
    %147 = arith.addf %145, %146 : vector<2x8xf32>
    %148 = vector.extract_strided_slice %147 {offsets = [0, 0], sizes = [2, 4], strides = [1, 1]} : vector<2x8xf32> to vector<2x4xf32>
    %149 = vector.extract_strided_slice %147 {offsets = [0, 4], sizes = [2, 4], strides = [1, 1]} : vector<2x8xf32> to vector<2x4xf32>
    %150 = math.tanh %149 : vector<2x4xf32>
    %cst_162 = arith.constant 1.000000e+00 : f32
    %151 = vector.broadcast %cst_162 : f32 to vector<2x4xf32>
    %152 = arith.addf %150, %151 : vector<2x4xf32>
    %cst_163 = arith.constant 6.000000e+00 : f32
    %153 = vector.broadcast %cst_163 : f32 to vector<2x4xf32>
    %154 = arith.mulf %153, %152 : vector<2x4xf32>
    %cst_164 = arith.constant -1.000000e+01 : f32
    %155 = vector.broadcast %cst_164 : f32 to vector<2x4xf32>
    %156 = arith.addf %155, %154 : vector<2x4xf32>
    %157 = math.exp %156 : vector<2x4xf32>
    %c0_165 = arith.constant 0 : index
    %c0_166 = arith.constant 0 : index
    %158 = vector.load %arg2[%c0_165, %c0_166] : memref<2x4xf32, #tpu.memory_space<vmem>>, vector<2x4xf32>
    %159 = arith.mulf %158, %157 : vector<2x4xf32>
    %160 = arith.addf %148, %159 : vector<2x4xf32>
    %cst_167 = arith.constant -5.000000e-01 : f32
    %161 = vector.broadcast %cst_167 : f32 to vector<2x4xf32>
    %162 = arith.mulf %161, %158 : vector<2x4xf32>
    %163 = arith.mulf %162, %158 : vector<2x4xf32>
    %164 = arith.subf %163, %156 : vector<2x4xf32>
    %cst_168 = arith.constant dense<0.000000e+00> : vector<2xf32>
    %165 = vector.multi_reduction <add>, %164, %cst_168 [1] : vector<2x4xf32> to vector<2xf32>
    %166 = vector.shape_cast %165 : vector<2xf32> to vector<2x1xf32>
    %cst_169 = arith.constant 3.67575407 : f32
    %167 = vector.broadcast %cst_169 : f32 to vector<2x1xf32>
    %168 = arith.subf %166, %167 : vector<2x1xf32>
    %169 = math.tanh %148 : vector<2x4xf32>
    %170 = math.tanh %160 : vector<2x4xf32>
    %171 = arith.mulf %170, %170 : vector<2x4xf32>
    %cst_170 = arith.constant 1.000000e+00 : f32
    %172 = vector.broadcast %cst_170 : f32 to vector<2x4xf32>
    %173 = arith.subf %172, %171 : vector<2x4xf32>
    %cst_171 = arith.constant 0.000000e+00 : f32
    %174 = vector.broadcast %cst_171 : f32 to vector<2x4xf32>
    %175 = arith.maximumf %173, %174 : vector<2x4xf32>
    %cst_172 = arith.constant 9.99999997E-7 : f32
    %176 = vector.broadcast %cst_172 : f32 to vector<2x4xf32>
    %177 = arith.addf %175, %176 : vector<2x4xf32>
    %178 = math.log %177 : vector<2x4xf32>
    %cst_173 = arith.constant dense<0.000000e+00> : vector<2xf32>
    %179 = vector.multi_reduction <add>, %178, %cst_173 [1] : vector<2x4xf32> to vector<2xf32>
    %180 = vector.shape_cast %179 : vector<2xf32> to vector<2x1xf32>
    %181 = arith.subf %168, %180 : vector<2x1xf32>
    %cst_174 = arith.constant 0.000000e+00 : f32
    %182 = vector.broadcast %cst_174 : f32 to vector<2x115xf32>
    %183 = tpu.concatenate %169, %170, %156, %181, %182 in 1 : vector<2x4xf32>, vector<2x4xf32>, vector<2x4xf32>, vector<2x1xf32>, vector<2x115xf32> -> vector<2x128xf32>
    %c0_175 = arith.constant 0 : index
    %c0_176 = arith.constant 0 : index
    %184 = vector.load %arg10[%c0_175, %c0_176] : memref<2x128xf32, #tpu.memory_space<vmem>>, vector<2x128xf32>
    tpu.vector_store %arg10[%c0_175, %c0_176], %183 {strides = array<i32>} : memref<2x128xf32, #tpu.memory_space<vmem>>, vector<2x128xf32>,
    return
  }
  func.func @transform_0(%arg0: i32) -> (i32, i32) {
    %c0_i32 = arith.constant 0 : i32
    %c0_i32_0 = arith.constant 0 : i32
    %c0_i32_1 = arith.constant 0 : i32
    return %c0_i32, %c0_i32_0 : i32, i32
  }
  func.func @transform_1(%arg0: i32) -> (i32, i32) {
    %c0_i32 = arith.constant 0 : i32
    %c0_i32_0 = arith.constant 0 : i32
    %c0_i32_1 = arith.constant 0 : i32
    return %c0_i32, %c0_i32_0 : i32, i32
  }
  func.func @transform_2(%arg0: i32) -> (i32, i32) {
    %c0_i32 = arith.constant 0 : i32
    %c0_i32_0 = arith.constant 0 : i32
    %c0_i32_1 = arith.constant 0 : i32
    return %c0_i32, %c0_i32_0 : i32, i32
  }
  func.func @transform_3(%arg0: i32) -> (i32, i32) {
    %c0_i32 = arith.constant 0 : i32
    %c0_i32_0 = arith.constant 0 : i32
    %c0_i32_1 = arith.constant 0 : i32
    return %c0_i32, %c0_i32_0 : i32, i32
  }
  func.func @transform_4(%arg0: i32) -> (i32, i32) {
    %c0_i32 = arith.constant 0 : i32
    %c0_i32_0 = arith.constant 0 : i32
    %c0_i32_1 = arith.constant 0 : i32
    return %c0_i32, %c0_i32_0 : i32, i32
  }
  func.func @transform_5(%arg0: i32) -> (i32, i32) {
    %c0_i32 = arith.constant 0 : i32
    %c0_i32_0 = arith.constant 0 : i32
    %c0_i32_1 = arith.constant 0 : i32
    return %c0_i32, %c0_i32_0 : i32, i32
  }
  func.func @transform_6(%arg0: i32) -> (i32, i32) {
    %c0_i32 = arith.constant 0 : i32
    %c0_i32_0 = arith.constant 0 : i32
    %c0_i32_1 = arith.constant 0 : i32
    return %c0_i32, %c0_i32_0 : i32, i32
  }
  func.func @transform_7(%arg0: i32) -> (i32, i32) {
    %c0_i32 = arith.constant 0 : i32
    %c0_i32_0 = arith.constant 0 : i32
    %c0_i32_1 = arith.constant 0 : i32
    return %c0_i32, %c0_i32_0 : i32, i32
  }
  func.func @transform_8(%arg0: i32) -> (i32, i32) {
    %c0_i32 = arith.constant 0 : i32
    %c0_i32_0 = arith.constant 0 : i32
    %c0_i32_1 = arith.constant 0 : i32
    return %c0_i32, %c0_i32_0 : i32, i32
  }
  func.func @transform_9(%arg0: i32) -> (i32, i32) {
    %c0_i32 = arith.constant 0 : i32
    %c0_i32_0 = arith.constant 0 : i32
    %c0_i32_1 = arith.constant 0 : i32
    return %c0_i32, %c0_i32_0 : i32, i32
  }
}

</mosaic_0001>

<bundles_post_ra>
// kernel: actor_forward.1
= control target key start
LH: loop header
LB: loop body
LE: loop exit
PB: predicated region body
PF: predicated region fallthrough
CT: control target
= control target key end

     0   :  { %vm99_vm0 = vcmask 1043456   ;;  %vm59_vm1 = vcmask 293888   ;;  %vm172_vm2 = vcmask 130048   ;;  %s1385_s23 = smov 96   ;;  %s1386_s24 = smov 48   ;;  %vm185_vm3 = vcmask 123904   ;;  %s2111_s2 = inlined_call_operand.vmem [shape: f32[36,16], index: 2, kind: input, shape index: {}]   ;;  %s2112_s8 = inlined_call_operand.vmem [shape: f32[8,128], index: 8, kind: input, shape index: {}]   ;;  %s2113_s0 = inlined_call_operand.vmem [shape: f32[98,36], index: 0, kind: input, shape index: {}]   ;;  %s2114_s3 = inlined_call_operand.vmem [shape: f32[144,16], index: 3, kind: input, shape index: {}]   ;;  %s2115_s4 = inlined_call_operand.vmem [shape: f32[400,32], index: 4, kind: input, shape index: {}]   ;;  %s2116_s5 = inlined_call_operand.vmem [shape: f32[32,32], index: 5, kind: input, shape index: {}]   ;;  %s2117_s6 = inlined_call_operand.vmem [shape: f32[32,32], index: 6, kind: input, shape index: {}]   ;;  %s2118_s7 = inlined_call_operand.vmem [shape: f32[32,8], index: 7, kind: input, shape index: {}]   ;;  %s2119_s1 = inlined_call_operand.vmem [shape: f32[2,4], index: 1, kind: input, shape index: {}]   ;;  %s2120_s9 = inlined_call_operand.vmem [shape: f32[2,128], index: 9, kind: output, shape index: {}]  }
   0x1   :  { %v57_v0 = vld [vmem:[%s2111_s2 + $0x20] sm:$0xf]  ;;  %v56_v1 = vld [vmem:[%s2111_s2 + $0x18] sm:$0xff]  ;;  %v55_v2 = vld [vmem:[%s2111_s2 + $0x10] sm:$0xff]  ;;  %s1388_s25 = smov 112   ;;  %s1389_s26 = smov 80  }
   0x2   :  { %1287 = vmatpush.msk.msra.mxu0 %vm99_vm0, %v57_v0  ;;  %1313 = vmatpush.msk.msra.mxu1 %vm99_vm0, %v57_v0  ;;  %v54_v3 = vld [vmem:[%s2111_s2 + $0x8] sm:$0xff]  ;;  %v53_v4 = vld [vmem:[%s2111_s2] sm:$0xff]  ;;  %v42_v7 = vld [vmem:[%s2113_s0 + $0x10] sm:$0xff]  ;;  %s1387_s2 = smov 16   ;;  %s1390_s29 = smov 64   ;;  %vm389_vm4 = vcmask 130050  }
   0x3   :  { %v40_v5 = vld [vmem:[%s2113_s0] sm:$0xff]  ;;  %v41_v6 = vld [vmem:[%s2113_s0 + $0x8] sm:$0xff]  ;;  %v43_v8 = vld [vmem:[%s2113_s0 + $0x18] sm:$0xff]  ;;  %s1391_s11 = smov 32   ;;  %vm377_vm5 = vcmask 1041408   ;;  %vm392_vm6 = vcmask 125952  }
   0x4   :  { %115 = vmatpush.msra.mxu0 %v56_v1  ;;  %1314 = vmatpush.msra.mxu1 %v56_v1  ;;  %v44_v9 = vld [vmem:[%s2113_s0 + $0x20] sm:$0xff]  ;;  %v45_v10 = vld [vmem:[%s2113_s0 + $0x28] sm:$0xff]  ;;  %v46_v11 = vld [vmem:[%s2113_s0 + $0x30] sm:$0xff]  ;;  %vm497_vm7 = vcmask 130052   ;;  %vm500_vm8 = vcmask 128000   ;;  %vm606_vm9 = vcmask 130054  }
   0x5   :  { %v47_v12 = vld [vmem:[%s2113_s0 + $0x38] sm:$0xff]  ;;  %v48_v13 = vld [vmem:[%s2113_s0 + $0x40] sm:$0xff]  ;;  %v49_v14 = vld [vmem:[%s2113_s0 + $0x48] sm:$0xff]  ;;  %vm594_vm10 = vcmask 1045504   ;;  %vm263_vm11 = vcmask 261120   ;;  %vm266_vm12 = vcmask 392192  }
   0x6   :  { %116 = vmatpush.msra.mxu0 %v55_v2  ;;  %1315 = vmatpush.msra.mxu1 %v55_v2  ;;  %v50_v15 = vld [vmem:[%s2113_s0 + $0x50] sm:$0xff]  ;;  %v1509_v16 = vld [vmem:[%s2112_s8] ss:$0 sm:$0xff]  ;;  %v51_v20 = vld [vmem:[%s2113_s0 + $0x58] sm:$0xff]  ;;  %vm269_vm13 = vcmask 523264   ;;  %vm272_vm14 = vcmask 654336  }
   0x7   :  { %v733_v45 = vld [vmem:[%s2114_s3 + $0x88] sm:$0xff]  ;;  %v732_v46 = vld [vmem:[%s2114_s3 + $0x80] sm:$0xff]  ;;  %vm275_vm15 = vcmask 785408  }
   0x8   :  { %117 = vmatpush.msra.mxu0 %v54_v3  ;;  %1316 = vmatpush.msra.mxu1 %v54_v3 }
   0x9   :  { %808 = vmatpush.msra.mxu2 %v733_v45 }
   0xa   :  { %118 = vmatpush.msra.mxu0 %v53_v4  ;;  %1317 = vmatpush.msra.mxu1 %v53_v4 }
   0xb   :  { %1288 = vmatmul.msk.f32.vlgmr.msra.gmra.mxu0 %vm59_vm1, %v40_v5  ;;  %1299 = vmatmul.msk.f32.vlgmr.msra.gmra.mxu1 %vm59_vm1, %v51_v20 }
   0xc   :  { %809 = vmatpush.msra.mxu2 %v732_v46 }
  0x13   :  { %1289 = vmatmul.msk.f32.gmra.mxu0 %vm59_vm1, %v41_v6 }
  0x1b   :  { %1290 = vmatmul.msk.f32.gmra.mxu0 %vm59_vm1, %v42_v7 }
  0x23   :  { %1291 = vmatmul.msk.f32.gmra.mxu0 %vm59_vm1, %v43_v8 }
  0x2b   :  { %1292 = vmatmul.msk.f32.gmra.mxu0 %vm59_vm1, %v44_v9 }
  0x33   :  { %1293 = vmatmul.msk.f32.gmra.mxu0 %vm59_vm1, %v45_v10 }
  0x3b   :  { %1294 = vmatmul.msk.f32.gmra.mxu0 %vm59_vm1, %v46_v11 }
  0x43   :  { %1295 = vmatmul.msk.f32.gmra.mxu0 %vm59_vm1, %v47_v12 }
  0x4b   :  { %1296 = vmatmul.msk.f32.gmra.mxu0 %vm59_vm1, %v48_v13 }
  0x53   :  { %1297 = vmatmul.msk.f32.gmra.mxu0 %vm59_vm1, %v49_v14 }
  0x5b   :  { %1298 = vmatmul.msk.f32.gmra.mxu0 %vm59_vm1, %v50_v15 }
  0x88   :  { %v120_v17 = vpop.f32.mrf.mxu0 }
  0x89   :  { %v121_v18 = vadd.f32 %v1509_v16, %v120_v17 }
  0x8b   :  { %v159_v19 = vmax.f32 %v121_v18, 0.0 }
  0x8d   :  { %173 = vst.msk [vmem:[#allocation2] sm:$0xff] %vm172_vm2, %v159_v19 }
  0x90   :  { %v123_v21 = vpop.f32.mrf.mxu0 }
  0x91   :  { %v124_v22 = vadd.f32 %v1509_v16, %v123_v21 }
  0x93   :  { %v160_v23 = vmax.f32 %v124_v22, 0.0 }
  0x95   :  { %174 = vst.msk [vmem:[#allocation2 + $0x8] sm:$0xff] %vm172_vm2, %v160_v23 }
  0x98   :  { %v126_v24 = vpop.f32.mrf.mxu0 }
  0x99   :  { %v127_v25 = vadd.f32 %v1509_v16, %v126_v24 }
  0x9b   :  { %v161_v26 = vmax.f32 %v127_v25, 0.0 }
  0x9c   :  { %v199_v27 = vld [vmem:[#allocation2 + $0x4] sm:$0xff]  ;;  %v200_v38 = vld [vmem:[#allocation2 + $0xc] sm:$0x3] }
  0x9d   :  { %v193_v28 = vld [vmem:[#allocation2 + $0x2] sm:$0xff]  ;;  %175 = vst.msk [vmem:[#allocation2 + $0x10] sm:$0xff] %vm172_vm2, %v161_v26  ;;  %247 = vrot.lane.b32.xlu2 %v199_v27, %s1385_s23  ;;  %v194_v33 = vld [vmem:[#allocation2 + $0xa] sm:$0x3] }
  0x9e   :  { %223 = vrot.lane.b32.xlu1 %v193_v28, %s1386_s24 }
  0xa0   :  { %v129_v29 = vpop.f32.mrf.mxu0 }
  0xa1   :  { %v130_v30 = vadd.f32 %v1509_v16, %v129_v29 }
  0xa3   :  { %v162_v31 = vmax.f32 %v130_v30, 0.0 }
  0xa4   :  { %v1524_v32 = vld [vmem:[#allocation2 + $0xe] sm:$0xff]  ;;  %v190_v37 = vld [vmem:[#allocation2 + $0x16] sm:$0x3] }
  0xa5   :  { %176 = vst.msk [vmem:[#allocation2 + $0x18] sm:$0xff] %vm172_vm2, %v162_v31  ;;  %207 = vrot.lane.b32.xlu0 %v1524_v32, %s1387_s2  ;;  %v195_v44 = vld [vmem:[#allocation2 + $0x10] sm:$0xff] }
  0xa6   :  { %225 = vrot.lane.b32.xlu1 %v194_v33, %s1386_s24 }
  0xa8   :  { %v132_v34 = vpop.f32.mrf.mxu0 }
  0xa9   :  { %v133_v35 = vadd.f32 %v1509_v16, %v132_v34 }
  0xab   :  { %v163_v36 = vmax.f32 %v133_v35, 0.0 }
  0xac   :  { %v201_v42 = vld [vmem:[#allocation2 + $0x12] sm:$0xff]  ;;  %v202_v59 = vld [vmem:[#allocation2 + $0x1a] sm:$0x3] }
  0xad   :  { %177 = vst.msk [vmem:[#allocation2 + $0x20] sm:$0xff] %vm172_vm2, %v163_v36  ;;  %209 = vrot.lane.b32.xlu0 %v190_v37, %s1387_s2  ;;  %v196_v52 = vld [vmem:[#allocation2 + $0x18] sm:$0x3]  ;;  %v298_v13 = vld [vmem:[#allocation2 + $0x1a] sm:$0x3] }
  0xae   :  { %249 = vrot.lane.b32.xlu1 %v200_v38, %s1385_s23  ;;  %v292_v5 = vld [vmem:[#allocation2 + $0x18] sm:$0x3] }
  0xb0   :  { %v135_v39 = vpop.f32.mrf.mxu0 }
  0xb1   :  { %v136_v40 = vadd.f32 %v1509_v16, %v135_v39 }
  0xb3   :  { %v164_v41 = vmax.f32 %v136_v40, 0.0 }
  0xb4   :  { %v1535_v43 = vld [vmem:[#allocation2 + $0x1e] sm:$0xff]  ;;  %v198_v57 = vld [vmem:[#allocation2 + $0x26] sm:$0x3] }
  0xb5   :  { %178 = vst.msk [vmem:[#allocation2 + $0x28] sm:$0xff] %vm172_vm2, %v164_v41  ;;  %255 = vrot.lane.b32.xlu0 %v201_v42, %s1388_s25  ;;  %239 = vrot.lane.b32.xlu2 %v1535_v43, %s1389_s26  ;;  %v1548_v47 = vld [vmem:[#allocation2 + $0x20] sm:$0xff] }
  0xb6   :  { %231 = vrot.lane.b32.xlu1 %v195_v44, %s1390_s29  ;;  %282 = vst.msk [vmem:[#allocation3 + $0x8] sm:$0xff] %vm172_vm2, %v1548_v47  ;;  %v192_v50 = vld [vmem:[#allocation2 + $0x24] sm:$0x3]  ;;  %v1572_v6 = vld [vmem:[#allocation2 + $0x1c] sm:$0xff]  ;;  %v294_v14 = vld [vmem:[#allocation2 + $0x26] sm:$0x3] }
  0xb7   :  { %v288_v3 = vld [vmem:[#allocation2 + $0x24] sm:$0x3]  ;;  %v401_v21 = vld [vmem:[#allocation2 + $0x26] sm:$0x3] }
  0xb8   :  { %v138_v48 = vpop.f32.mrf.mxu0 }
  0xb9   :  { %v139_v49 = vadd.f32 %v1509_v16, %v138_v48 }
  0xbb   :  { %v165_v51 = vmax.f32 %v139_v49, 0.0 }
  0xbc   :  { %v204_v53 = vld [vmem:[#allocation2 + $0x28] sm:$0x3] }
  0xbd   :  { %179 = vst.msk [vmem:[#allocation2 + $0x30] sm:$0xff] %vm172_vm2, %v165_v51  ;;  %233 = vrot.lane.b32.xlu0 %v196_v52, %s1390_s29  ;;  %217 = vrot.lane.b32.xlu2 %v192_v50, %s1391_s11  ;;  %v703_v54 = vld [vmem:[#allocation3 + $0x8] sm:$0xff]  ;;  %v300_v25 = vld [vmem:[#allocation2 + $0x28] sm:$0x3] }
  0xbe   :  { %321 = vrot.lane.b32.xlu1 %v195_v44, %s1386_s24  ;;  %284 = vst.msk [vmem:[#allocation3 + $0x18] sm:$0x3] %vm185_vm3, %v204_v53  ;;  %1301 = vmatmul.msk.f32.vlgmr.msra.gmra.mxu2 %vm172_vm2, %v703_v54  ;;  %v407_v29 = vld [vmem:[#allocation2 + $0x28] sm:$0x3]  ;;  %v731_v54 = vld [vmem:[%s2114_s3 + $0x78] sm:$0xff] }
  0xbf   :  { %756 = vmatpush.msrb.mxu1 %v731_v54 }
  0xc0   :  { %v141_v55 = vpop.f32.mrf.mxu0 }
  0xc1   :  { %v142_v56 = vadd.f32 %v1509_v16, %v141_v55 }
  0xc3   :  { %v166_v58 = vmax.f32 %v142_v56, 0.0  ;;  %v730_v56 = vld [vmem:[%s2114_s3 + $0x70] sm:$0xff] }
  0xc4   :  { %v1560_v60 = vld [vmem:[#allocation2 + $0x2e] sm:$0xff]  ;;  %v302_v61 = vld [vmem:[#allocation2 + $0x36] sm:$0x3]  ;;  %757 = vmatpush.msrb.mxu1 %v730_v56 }
  0xc5   :  { %v379_v62 = vrot.slane %v1560_v60, 6  ;;  %v382_v63 = vrot.slane %v302_v61, 6  ;;  %180 = vst.msk [vmem:[#allocation2 + $0x38] sm:$0xff] %vm172_vm2, %v166_v58  ;;  %257 = vrot.lane.b32.xlu0 %v202_v59, %s1388_s25  ;;  %241 = vrot.lane.b32.xlu2 %v198_v57, %s1389_s26  ;;  %v290_v10 = vld [vmem:[#allocation2 + $0x32] sm:$0x3]  ;;  %v1606_v33 = vld [vmem:[#allocation2 + $0x2a] sm:$0xff] }
  0xc6   :  { %345 = vrot.lane.b32.xlu1 %v201_v42, %s1385_s23  ;;  %v296_v19 = vld [vmem:[#allocation2 + $0x34] sm:$0x3]  ;;  %v409_v34 = vld [vmem:[#allocation2 + $0x36] sm:$0x3]  ;;  %v295_v36 = vld [vmem:[#allocation2 + $0x2c] sm:$0xff] }
  0xc7   :  { %390 = vst.msk [vmem:[#allocation3 + $0x18] sm:$0xfc] %vm389_vm4, %v379_v62  ;;  %v383_v0 = vsel %vm377_vm5, %v379_v62, %v382_v63  ;;  %v403_v30 = vld [vmem:[#allocation2 + $0x34] sm:$0x3]  ;;  %v397_v50 = vld [vmem:[#allocation2 + $0x32] sm:$0x3] }
  0xc8   :  { %v144_v1 = vpop.f32.mrf.mxu0  ;;  %393 = vst.msk [vmem:[#allocation3 + $0x28] sm:$0xf] %vm392_vm6, %v383_v0  ;;  %v509_v39 = vld [vmem:[#allocation2 + $0x34] sm:$0x3]  ;;  %v729_v57 = vld [vmem:[%s2114_s3 + $0x68] sm:$0xff]  ;;  %v728_v59 = vld [vmem:[%s2114_s3 + $0x60] sm:$0xff] }
  0xc9   :  { %v145_v2 = vadd.f32 %v1509_v16, %v144_v1  ;;  %758 = vmatpush.msrb.mxu1 %v729_v57  ;;  %v727_v63 = vld [vmem:[%s2114_s3 + $0x58] sm:$0xff]  ;;  %v52_v1 = vld [vmem:[%s2113_s0 + $0x60] sm:$0x3]  ;;  %vm1251_vm6 = vcmask 25600  }
  0xca   :  { %1300 = vmatmul.msk.f32.gmra.mxu1 %vm59_vm1, %v52_v1  ;;  %vm278_vm1 = vcmask 916480  }
  0xcb   :  { %v167_v4 = vmax.f32 %v145_v2, 0.0  ;;  %759 = vmatpush.msrb.mxu1 %v728_v59  ;;  %v726_v2 = vld [vmem:[%s2114_s3 + $0x50] sm:$0xff]  ;;  %v187_v59 = vld [vmem:[#allocation2] sm:$0xff] }
  0xcc   :  { %v1613_v35 = vld [vmem:[#allocation2 + $0x38] sm:$0xff] }
  0xcd   :  { %181 = vst.msk [vmem:[#allocation2 + $0x40] sm:$0xff] %vm172_vm2, %v167_v4  ;;  %323 = vrot.lane.b32.xlu0 %v292_v5, %s1386_s24  ;;  %307 = vrot.lane.b32.xlu2 %v288_v3, %s1387_s2  ;;  %v725_v3 = vld [vmem:[%s2114_s3 + $0x48] sm:$0xff] }
  0xce   :  { %305 = vrot.lane.b32.xlu1 %v1572_v6, %s1387_s2  ;;  %v705_v7 = vld [vmem:[#allocation3 + $0x18] sm:$0xff]  ;;  %760 = vmatpush.msrb.mxu1 %v727_v63 }
  0xcf   :  { %1302 = vmatmul.msk.f32.gmra.mxu2 %vm172_vm2, %v705_v7  ;;  %v724_v7 = vld [vmem:[%s2114_s3 + $0x40] sm:$0xff] }
  0xd0   :  { %v147_v8 = vpop.f32.mrf.mxu0  ;;  %761 = vmatpush.msrb.mxu1 %v726_v2 }
  0xd1   :  { %v148_v9 = vadd.f32 %v1509_v16, %v147_v8 }
  0xd2   :  { %762 = vmatpush.msrb.mxu1 %v725_v3 }
  0xd3   :  { %v168_v11 = vmax.f32 %v148_v9, 0.0 }
  0xd4   :  { %v1578_v12 = vld [vmem:[#allocation2 + $0x3c] sm:$0xff]  ;;  %v411_v23 = vld [vmem:[#allocation2 + $0x44] sm:$0x3]  ;;  %763 = vmatpush.msrb.mxu1 %v724_v7 }
  0xd5   :  { %v487_v15 = vrot.slane %v1578_v12, 4  ;;  %347 = vrot.lane.b32.xlu0 %v298_v13, %s1385_s23  ;;  %331 = vrot.lane.b32.xlu2 %v294_v14, %s1390_s29  ;;  %182 = vst.msk [vmem:[#allocation2 + $0x48] sm:$0xff] %vm172_vm2, %v168_v11  ;;  %v490_v24 = vrot.slane %v411_v23, 4  ;;  %v399_v42 = vld [vmem:[#allocation2 + $0x40] sm:$0x3]  ;;  %v722_v14 = vld [vmem:[%s2114_s3 + $0x30] sm:$0xff] }
  0xd6   :  { %315 = vrot.lane.b32.xlu1 %v290_v10, %s1391_s11  ;;  %v405_v49 = vld [vmem:[#allocation2 + $0x42] sm:$0x3]  ;;  %v505_v58 = vld [vmem:[#allocation2 + $0x40] sm:$0x3]  ;;  %v723_v10 = vld [vmem:[%s2114_s3 + $0x38] sm:$0xff] }
  0xd7   :  { %498 = vst.msk [vmem:[#allocation3 + $0x28] sm:$0xf0] %vm497_vm7, %v487_v15  ;;  %v491_v28 = vsel %vm99_vm0, %v487_v15, %v490_v24  ;;  %v511_v5 = vld [vmem:[#allocation2 + $0x42] sm:$0x3]  ;;  %764 = vmatpush.msrb.mxu1 %v723_v10  ;;  %vm1274_vm7 = vcmask 31744  }
  0xd8   :  { %v150_v17 = vpop.f32.mrf.mxu0  ;;  %501 = vst.msk [vmem:[#allocation3 + $0x38] sm:$0x3f] %vm500_vm8, %v491_v28  ;;  %vm1276_vm8 = vcmask 64512  }
  0xd9   :  { %v151_v18 = vadd.f32 %v1509_v16, %v150_v17  ;;  %v721_v17 = vld [vmem:[%s2114_s3 + $0x28] sm:$0xff]  ;;  %765 = vmatpush.msrb.mxu1 %v722_v14 }
  0xdb   :  { %v169_v20 = vmax.f32 %v151_v18, 0.0  ;;  %766 = vmatpush.msrb.mxu1 %v721_v17 }
  0xdc   :  { %v506_v4 = vld [vmem:[#allocation2 + $0x46] sm:$0xff] }
  0xdd   :  { %215 = vrot.lane.b32.xlu0 %v1572_v6, %s1391_s11  ;;  %432 = vrot.lane.b32.xlu2 %v401_v21, %s1386_s24  ;;  %183 = vst.msk [vmem:[#allocation2 + $0x50] sm:$0xff] %vm172_vm2, %v169_v20  ;;  %v512_v18 = vld [vmem:[#allocation2 + $0x48] sm:$0xff]  ;;  %v517_v21 = vld [vmem:[#allocation2 + $0x44] sm:$0x3] }
  0xde   :  { %339 = vrot.lane.b32.xlu1 %v296_v19, %s1389_s26  ;;  %v707_v22 = vld [vmem:[#allocation3 + $0x28] sm:$0xff]  ;;  %v507_v19 = vld [vmem:[#allocation2 + $0x4e] sm:$0x3] }
  0xdf   :  { %1303 = vmatmul.msk.f32.gmra.mxu2 %vm172_vm2, %v707_v22  ;;  %v720_v22 = vld [vmem:[%s2114_s3 + $0x20] sm:$0xff] }
  0xe0   :  { %767 = vmatpush.msrb.mxu1 %v720_v22 }
  0xe4   :  { %v1592_v26 = vld [vmem:[#allocation2 + $0x4a] sm:$0xff]  ;;  %v519_v37 = vld [vmem:[#allocation2 + $0x52] sm:$0x3] }
  0xe5   :  { %329 = vrot.lane.b32.xlu0 %v1535_v43, %s1390_s29  ;;  %355 = vrot.lane.b32.xlu2 %v300_v25, %s1388_s25  ;;  %v596_v27 = vrot.slane %v1592_v26, 2  ;;  %v599_v38 = vrot.slane %v519_v37, 2  ;;  %v719_v25 = vld [vmem:[%s2114_s3 + $0x18] sm:$0xff]  ;;  %v515_v37 = vld [vmem:[#allocation2 + $0x36] sm:$0x3] }
  0xe6   :  { %462 = vrot.lane.b32.xlu1 %v1560_v60, %s1388_s25  ;;  %768 = vmatpush.msrb.mxu1 %v719_v25 }
  0xe7   :  { %607 = vst.msk [vmem:[#allocation3 + $0x38] sm:$0xc0] %vm606_vm9, %v596_v27  ;;  %v600_v41 = vsel %vm594_vm10, %v596_v27, %v599_v38  ;;  %v716_v38 = vld [vmem:[%s2114_s3] sm:$0xff]  ;;  %vm1278_vm9 = vcmask 97280  }
  0xe8   :  { %609 = vst.msk [vmem:[#allocation3 + $0x48] sm:$0xff] %vm172_vm2, %v600_v41 }
  0xed   :  { %353 = vrot.lane.b32.xlu0 %v1548_v47, %s1388_s25  ;;  %456 = vrot.lane.b32.xlu2 %v407_v29, %s1385_s23 }
  0xee   :  { %440 = vrot.lane.b32.xlu1 %v403_v30, %s1390_s29  ;;  %v709_v31 = vld [vmem:[#allocation3 + $0x38] sm:$0xff] }
  0xef   :  { %1304 = vmatmul.msk.f32.gmra.mxu2 %vm172_vm2, %v709_v31  ;;  %v711_v46 = vld [vmem:[#allocation3 + $0x48] sm:$0xff] }
  0xf0   :  { %v718_v31 = vld [vmem:[%s2114_s3 + $0x10] sm:$0xff] }
  0xf1   :  { %769 = vmatpush.msrb.mxu1 %v718_v31 }
  0xf5   :  { %430 = vrot.lane.b32.xlu0 %v1535_v43, %s1386_s24  ;;  %313 = vrot.lane.b32.xlu2 %v1606_v33, %s1391_s11  ;;  %v1631_v43 = vld [vmem:[#allocation2 + $0x3a] sm:$0xff] }
  0xf6   :  { %464 = vrot.lane.b32.xlu1 %v409_v34, %s1388_s25  ;;  %v717_v34 = vld [vmem:[%s2114_s3 + $0x8] sm:$0xff] }
  0xf7   :  { %v1625_v40 = vpop.permute.xlu2 %247  ;;  %1305 = vmatmul.msk.f32.gmra.mxu2 %vm172_vm2, %v711_v46  ;;  %770 = vmatpush.msrb.mxu1 %v717_v34 }
  0xf9   :  { %771 = vmatpush.msrb.mxu1 %v716_v38 }
  0xfd   :  { %454 = vrot.lane.b32.xlu0 %v1548_v47, %s1385_s23  ;;  %337 = vrot.lane.b32.xlu2 %v295_v36, %s1389_s26  ;;  %v153_v47 = vpop.f32.mrf.mxu1 }
  0xfe   :  { %422 = vrot.lane.b32.xlu1 %v1613_v35, %s1391_s11  ;;  %v154_v48 = vadd.f32 %v1509_v16, %v153_v47 }
 0x100   :  { %v170_v51 = vmax.f32 %v154_v48, 0.0 }
 0x102   :  { %184 = vst.msk [vmem:[#allocation2 + $0x58] sm:$0xff] %vm172_vm2, %v170_v51 }
 0x105   :  { %540 = vrot.lane.b32.xlu0 %v509_v39, %s1386_s24  ;;  %414 = vrot.lane.b32.xlu2 %v1606_v33, %s1387_s2 }
 0x106   :  { %522 = vrot.lane.b32.xlu1 %v1613_v35, %s1387_s2 }
 0x109   :  { %v626_v13 = vld [vmem:[#allocation2 + $0x58] sm:$0xff] }
 0x10a   :  { %699 = vst.msk [vmem:[#allocation3 + $0x58] sm:$0xff] %vm172_vm2, %v626_v13  ;;  %v614_v48 = vld [vmem:[#allocation2 + $0x54] sm:$0xff]  ;;  %v615_v54 = vld [vmem:[#allocation2 + $0x5c] sm:$0x3]  ;;  %v619_v13 = vld [vmem:[#allocation2 + $0x50] sm:$0x3] }
 0x10d   :  { %424 = vrot.lane.b32.xlu0 %v399_v42, %s1391_s11  ;;  %438 = vrot.lane.b32.xlu2 %v295_v36, %s1390_s29 }
 0x10e   :  { %446 = vrot.lane.b32.xlu1 %v1631_v43, %s1389_s26 }
 0x10f   :  { %v1635_v44 = vpop.permute.xlu2 %239 }
 0x110   :  { %v1637_v45 = vpop.permute.xlu1 %223 }
 0x111   :  { %v713_v29 = vld [vmem:[#allocation3 + $0x58] sm:$0xff] }
 0x112   :  { %1306 = vmatmul.msk.f32.gmra.mxu2 %vm172_vm2, %v713_v29 }
 0x115   :  { %448 = vrot.lane.b32.xlu0 %v405_v49, %s1389_s26  ;;  %416 = vrot.lane.b32.xlu2 %v397_v50, %s1387_s2  ;;  %v513_v49 = vld [vmem:[#allocation2 + $0x50] sm:$0x3] }
 0x116   :  { %546 = vrot.lane.b32.xlu1 %v1631_v43, %s1390_s29 }
 0x117   :  { %v1646_v52 = vpop.permute.xlu0 %207  ;;  %v218_v53 = vpop.permute.xlu2 %217 }
 0x118   :  { %v226_v55 = vpop.permute.xlu1 %225 }
 0x11d   :  { %570 = vrot.lane.b32.xlu0 %v1578_v12, %s1388_s25  ;;  %538 = vrot.lane.b32.xlu2 %v295_v36, %s1386_s24 }
 0x11e   :  { %524 = vrot.lane.b32.xlu1 %v505_v58, %s1387_s2  ;;  %v613_v58 = vld [vmem:[#allocation2 + $0x4e] sm:$0x3] }
 0x11f   :  { %v210_v61 = vpop.permute.xlu0 %209  ;;  %v242_v62 = vpop.permute.xlu2 %241 }
 0x120   :  { %v1667_v0 = vpop.permute.xlu1 %249 }
 0x125   :  { %530 = vrot.lane.b32.xlu0 %v506_v4, %s1391_s11  ;;  %562 = vrot.lane.b32.xlu2 %v1560_v60, %s1385_s23  ;;  %v188_v60 = vld [vmem:[#allocation2 + $0x8] sm:$0x3] }
 0x126   :  { %548 = vrot.lane.b32.xlu1 %v511_v5, %s1390_s29  ;;  %v262_v15 = vsel %vm172_vm2, %v188_v60, %v210_v61  ;;  %v261_v61 = vsel %vm172_vm2, %v187_v59, %v1646_v52  ;;  %v617_v60 = vld [vmem:[#allocation2 + $0x42] sm:$0x3] }
 0x127   :  { %v1686_v8 = vpop.permute.xlu0 %255  ;;  %v1688_v9 = vpop.permute.xlu2 %307  ;;  %v265_v20 = vsel %vm263_vm11, %v262_v15, %v218_v53  ;;  %v620_v53 = vld [vmem:[#allocation2 + $0x56] sm:$0xff] }
 0x128   :  { %v1693_v11 = vpop.permute.xlu1 %231  ;;  %v268_v27 = vsel %vm266_vm12, %v265_v20, %v226_v55  ;;  %v625_v20 = vld [vmem:[#allocation2 + $0x52] sm:$0x3] }
 0x12d   :  { %554 = vrot.lane.b32.xlu0 %v512_v18, %s1389_s26  ;;  %532 = vrot.lane.b32.xlu2 %v507_v19, %s1391_s11 }
 0x12e   :  { %572 = vrot.lane.b32.xlu1 %v517_v21, %s1388_s25  ;;  %v623_v21 = vld [vmem:[#allocation2 + $0x44] sm:$0x3] }
 0x12f   :  { %v234_v23 = vpop.permute.xlu0 %233  ;;  %v1710_v24 = vpop.permute.xlu2 %331 }
 0x130   :  { %v1716_v28 = vpop.permute.xlu1 %321  ;;  %v271_v30 = vsel %vm269_vm13, %v268_v27, %v234_v23 }
 0x131   :  { %v274_v36 = vsel %vm272_vm14, %v271_v30, %v242_v62  ;;  %v286_v62 = vld [vmem:[#allocation2 + $0x16] sm:$0x3] }
 0x132   :  { %v277_v41 = vsel %vm275_vm15, %v274_v36, %v1667_v0  ;;  %v360_v1 = vsel %vm172_vm2, %v286_v62, %v1688_v9 }
 0x135   :  { %564 = vrot.lane.b32.xlu0 %v515_v37, %s1385_s23  ;;  %630 = vrot.lane.b32.xlu2 %v506_v4, %s1387_s2 }
 0x136   :  { %646 = vrot.lane.b32.xlu1 %v1631_v43, %s1386_s24 }
 0x137   :  { %v258_v39 = vpop.permute.xlu0 %257  ;;  %v1736_v42 = vpop.permute.xlu2 %432 }
 0x138   :  { %v280_v46 = vsel %vm278_vm1, %v277_v41, %v258_v39  ;;  %v346_v47 = vpop.permute.xlu1 %345 }
 0x139   :  { %283 = vst [vmem:[#allocation3 + $0x10] sm:$0x3] %v280_v46 }
 0x13d   :  { %638 = vrot.lane.b32.xlu0 %v614_v48, %s1391_s11  ;;  %556 = vrot.lane.b32.xlu2 %v513_v49, %s1389_s26 }
 0x13e   :  { %670 = vrot.lane.b32.xlu1 %v1578_v12, %s1385_s23  ;;  %v621_v12 = vld [vmem:[#allocation2 + $0x5e] sm:$0x3] }
 0x13f   :  { %v324_v43 = vpop.permute.xlu0 %323  ;;  %v356_v50 = vpop.permute.xlu2 %355 }
 0x140   :  { %v306_v51 = vpop.permute.xlu1 %305 }
 0x141   :  { %v359_v7 = vsel %vm172_vm2, %v1524_v32, %v306_v51 }
 0x145   :  { %662 = vrot.lane.b32.xlu0 %v620_v53, %s1389_s26  ;;  %654 = vrot.lane.b32.xlu2 %v512_v18, %s1390_s29  ;;  %v395_v53 = vld [vmem:[#allocation2 + $0x24] sm:$0x3] }
 0x146   :  { %640 = vrot.lane.b32.xlu1 %v615_v54, %s1391_s11 }
 0x147   :  { %v348_v55 = vpop.permute.xlu0 %347  ;;  %v1746_v56 = vpop.permute.xlu2 %456 }
 0x148   :  { %v316_v57 = vpop.permute.xlu1 %315 }
 0x149   :  { %v362_v4 = vsel %vm263_vm11, %v360_v1, %v316_v57 }
 0x14a   :  { %v364_v10 = vsel %vm266_vm12, %v362_v4, %v324_v43 }
 0x14b   :  { %v366_v32 = vsel %vm269_vm13, %v364_v10, %v1710_v24 }
 0x14d   :  { %632 = vrot.lane.b32.xlu0 %v613_v58, %s1387_s2  ;;  %678 = vrot.lane.b32.xlu2 %v1592_v26, %s1388_s25 }
 0x14e   :  { %664 = vrot.lane.b32.xlu1 %v621_v12, %s1389_s26 }
 0x14f   :  { %v216_v63 = vpop.permute.xlu0 %215  ;;  %v314_v0 = vpop.permute.xlu2 %313 }
 0x150   :  { %v264_v2 = vsel %vm263_vm11, %v261_v61, %v216_v63  ;;  %v340_v3 = vpop.permute.xlu1 %339 }
 0x151   :  { %v267_v26 = vsel %vm266_vm12, %v264_v2, %v1637_v45  ;;  %v361_v45 = vsel %vm263_vm11, %v359_v7, %v314_v0  ;;  %v368_v15 = vsel %vm272_vm14, %v366_v32, %v340_v3 }
 0x152   :  { %v270_v5 = vsel %vm269_vm13, %v267_v26, %v1693_v11  ;;  %v370_v18 = vsel %vm275_vm15, %v368_v15, %v348_v55 }
 0x153   :  { %v273_v52 = vsel %vm272_vm14, %v270_v5, %v1635_v44  ;;  %v372_v22 = vsel %vm278_vm1, %v370_v18, %v356_v50 }
 0x154   :  { %v276_v9 = vsel %vm275_vm15, %v273_v52, %v1625_v40  ;;  %v363_v40 = vsel %vm266_vm12, %v361_v45, %v1716_v28  ;;  %v380_v29 = vrot.slane %v372_v22, 6 }
 0x155   :  { %v279_v14 = vsel %vm278_vm1, %v276_v9, %v1686_v8  ;;  %656 = vrot.lane.b32.xlu0 %v619_v13, %s1390_s29  ;;  %648 = vrot.lane.b32.xlu2 %v617_v60, %s1386_s24 }
 0x156   :  { %772 = vmatmul.f32.vlgmr.msrb.gmra.mxu1 %v279_v14 }
 0x157   :  { %v330_v44 = vpop.permute.xlu0 %329  ;;  %v338_v11 = vpop.permute.xlu2 %337 }
 0x158   :  { %v463_v17 = vpop.permute.xlu1 %462  ;;  %v365_v8 = vsel %vm269_vm13, %v363_v40, %v330_v44 }
 0x159   :  { %v367_v19 = vsel %vm272_vm14, %v365_v8, %v338_v11 }
 0x15a   :  { %v369_v24 = vsel %vm275_vm15, %v367_v19, %v346_v47 }
 0x15d   :  { %680 = vrot.lane.b32.xlu0 %v625_v20, %s1388_s25  ;;  %672 = vrot.lane.b32.xlu2 %v623_v21, %s1385_s23  ;;  %v156_v20 = vpop.f32.mrf.mxu1 }
 0x15e   :  { %v157_v21 = vadd.f32 %v1509_v16, %v156_v20 }
 0x15f   :  { %v354_v23 = vpop.permute.xlu0 %353  ;;  %v415_v25 = vpop.permute.xlu2 %414 }
 0x160   :  { %v371_v27 = vsel %vm278_vm1, %v369_v24, %v354_v23  ;;  %v441_v28 = vpop.permute.xlu1 %440  ;;  %v468_v49 = vsel %vm172_vm2, %v1572_v6, %v415_v25 }
 0x161   :  { %v378_v30 = vrot.slane %v371_v27, 6 }
 0x163   :  { %v381_v31 = vsel %vm377_vm5, %v378_v30, %v380_v29  ;;  %388 = vst [vmem:[#allocation3 + $0x10] sm:$0xfc] %v378_v30 }
 0x164   :  { %391 = vst [vmem:[#allocation3 + $0x20] sm:$0xf] %v381_v31 }
 0x167   :  { %v431_v34 = vpop.permute.xlu0 %430  ;;  %v439_v36 = vpop.permute.xlu2 %438 }
 0x168   :  { %v465_v37 = vpop.permute.xlu1 %464 }
 0x16a   :  { %v704_v38 = vld [vmem:[#allocation3 + $0x10] sm:$0xff] }
 0x16b   :  { %775 = vmatmul.f32.gmra.mxu1 %v704_v38 }
 0x16f   :  { %v455_v39 = vpop.permute.xlu0 %454  ;;  %v417_v46 = vpop.permute.xlu2 %416 }
 0x170   :  { %v423_v41 = vpop.permute.xlu1 %422  ;;  %v469_v55 = vsel %vm172_vm2, %v395_v53, %v417_v46 }
 0x171   :  { %v470_v43 = vsel %vm263_vm11, %v468_v49, %v423_v41 }
 0x172   :  { %v472_v51 = vsel %vm266_vm12, %v470_v43, %v431_v34 }
 0x173   :  { %v474_v57 = vsel %vm269_vm13, %v472_v51, %v439_v36 }
 0x177   :  { %v541_v48 = vpop.permute.xlu0 %540  ;;  %v539_v50 = vpop.permute.xlu2 %538 }
 0x178   :  { %v523_v47 = vpop.permute.xlu1 %522 }
 0x179   :  { %v576_v14 = vsel %vm172_vm2, %v1606_v33, %v523_v47 }
 0x17f   :  { %v425_v54 = vpop.permute.xlu0 %424  ;;  %v563_v0 = vpop.permute.xlu2 %562 }
 0x180   :  { %v447_v58 = vpop.permute.xlu1 %446  ;;  %v471_v12 = vsel %vm263_vm11, %v469_v55, %v425_v54 }
 0x181   :  { %v476_v59 = vsel %vm272_vm14, %v474_v57, %v447_v58  ;;  %v473_v62 = vsel %vm266_vm12, %v471_v12, %v1736_v42 }
 0x182   :  { %v478_v61 = vsel %vm275_vm15, %v476_v59, %v455_v39  ;;  %v475_v2 = vsel %vm269_vm13, %v473_v62, %v441_v28  ;;  %v171_v28 = vmax.f32 %v157_v21, 0.0  ;;  %v611_v59 = vld [vmem:[#allocation2 + $0x40] sm:$0x3] }
 0x183   :  { %v480_v6 = vsel %vm278_vm1, %v478_v61, %v463_v17 }
 0x184   :  { %v486_v63 = vrot.slane %v480_v6, 4  ;;  %186 = vst.msk [vmem:[#allocation2 + $0x60] sm:$0x3] %vm185_vm3, %v171_v28 }
 0x186   :  { %496 = vst [vmem:[#allocation3 + $0x20] sm:$0xf0] %v486_v63 }
 0x187   :  { %v449_v1 = vpop.permute.xlu0 %448  ;;  %v533_v9 = vpop.permute.xlu2 %532 }
 0x188   :  { %v477_v3 = vsel %vm272_vm14, %v475_v2, %v449_v1  ;;  %v547_v4 = vpop.permute.xlu1 %546 }
 0x189   :  { %v479_v26 = vsel %vm275_vm15, %v477_v3, %v1746_v56  ;;  %v503_v56 = vld [vmem:[#allocation2 + $0x32] sm:$0x3] }
 0x18a   :  { %v481_v5 = vsel %vm278_vm1, %v479_v26, %v465_v37 }
 0x18b   :  { %v488_v52 = vrot.slane %v481_v5, 4  ;;  %v627_v39 = vld [vmem:[#allocation2 + $0x60] sm:$0x3] }
 0x18c   :  { %701 = vst.msk [vmem:[#allocation3 + $0x68] sm:$0x3] %vm185_vm3, %v627_v39 }
 0x18d   :  { %v489_v7 = vsel %vm99_vm0, %v486_v63, %v488_v52  ;;  %v706_v10 = vld [vmem:[#allocation3 + $0x20] sm:$0xff]  ;;  %vm1110_vm0 = vcmask 254976  }
 0x18e   :  { %499 = vst [vmem:[#allocation3 + $0x30] sm:$0x3f] %v489_v7  ;;  %778 = vmatmul.f32.gmra.mxu1 %v706_v10  ;;  %v1844_v7 = vld [vmem:[%s2112_s8 + $0x1] ss:$0 sm:$0xff] }
 0x18f   :  { %v571_v42 = vpop.permute.xlu0 %570  ;;  %v631_v44 = vpop.permute.xlu2 %630 }
 0x190   :  { %v525_v13 = vpop.permute.xlu1 %524 }
 0x191   :  { %v577_v15 = vsel %vm172_vm2, %v503_v56, %v525_v13 }
 0x192   :  { %v579_v8 = vsel %vm263_vm11, %v577_v15, %v533_v9  ;;  %v811_v9 = vpop.f32.mrf.mxu2 }
 0x193   :  { %v581_v22 = vsel %vm266_vm12, %v579_v8, %v541_v48  ;;  %v684_v48 = vsel %vm172_vm2, %v1613_v35, %v631_v44  ;;  %v715_v43 = vld [vmem:[#allocation3 + $0x68] sm:$0x3] }
 0x194   :  { %1307 = vmatmul.msk.f32.gmra.mxu2 %vm172_vm2, %v715_v43 }
 0x197   :  { %v531_v60 = vpop.permute.xlu0 %530  ;;  %v557_v25 = vpop.permute.xlu2 %556 }
 0x198   :  { %v578_v45 = vsel %vm263_vm11, %v576_v14, %v531_v60  ;;  %v549_v32 = vpop.permute.xlu1 %548 }
 0x199   :  { %v580_v11 = vsel %vm266_vm12, %v578_v45, %v539_v50  ;;  %v583_v27 = vsel %vm269_vm13, %v581_v22, %v549_v32 }
 0x19a   :  { %v582_v17 = vsel %vm269_vm13, %v580_v11, %v547_v4  ;;  %v585_v30 = vsel %vm272_vm14, %v583_v27, %v557_v25  ;;  %v814_v44 = vpop.f32.mrf.mxu2 }
 0x19f   :  { %v555_v40 = vpop.permute.xlu0 %554  ;;  %v655_v41 = vpop.permute.xlu2 %654 }
 0x1a0   :  { %v584_v18 = vsel %vm272_vm14, %v582_v17, %v555_v40  ;;  %v573_v24 = vpop.permute.xlu1 %572 }
 0x1a1   :  { %v586_v19 = vsel %vm275_vm15, %v584_v18, %v563_v0 }
 0x1a2   :  { %v588_v33 = vsel %vm278_vm1, %v586_v19, %v571_v42  ;;  %v817_v17 = vpop.f32.mrf.mxu2 }
 0x1a3   :  { %v595_v23 = vrot.slane %v588_v33, 2 }
 0x1a5   :  { %605 = vst [vmem:[#allocation3 + $0x30] sm:$0xc0] %v595_v23 }
 0x1a7   :  { %v565_v29 = vpop.permute.xlu0 %564  ;;  %v679_v55 = vpop.permute.xlu2 %678 }
 0x1a8   :  { %v587_v31 = vsel %vm275_vm15, %v585_v30, %v565_v29  ;;  %v647_v38 = vpop.permute.xlu1 %646 }
 0x1a9   :  { %v589_v34 = vsel %vm278_vm1, %v587_v31, %v573_v24 }
 0x1aa   :  { %v597_v36 = vrot.slane %v589_v34, 2  ;;  %v820_v30 = vpop.f32.mrf.mxu2 }
 0x1ac   :  { %v598_v16 = vsel %vm594_vm10, %v595_v23, %v597_v36  ;;  %v708_v37 = vld [vmem:[#allocation3 + $0x30] sm:$0xff]  ;;  %vm1280_vm10 = vcmask 105472  }
 0x1ad   :  { %781 = vmatmul.f32.gmra.mxu1 %v708_v37 }
 0x1af   :  { %v639_v46 = vpop.permute.xlu0 %638  ;;  %v649_v6 = vpop.permute.xlu2 %648 }
 0x1b0   :  { %v686_v47 = vsel %vm263_vm11, %v684_v48, %v639_v46  ;;  %v671_v50 = vpop.permute.xlu1 %670 }
 0x1b1   :  { %v688_v49 = vsel %vm266_vm12, %v686_v47, %v647_v38 }
 0x1b2   :  { %v690_v53 = vsel %vm269_vm13, %v688_v49, %v655_v41  ;;  %v823_v37 = vpop.f32.mrf.mxu2 }
 0x1b5   :  { %784 = vmatmul.f32.gmra.mxu1 %v598_v16 }
 0x1b7   :  { %v663_v51 = vpop.permute.xlu0 %662  ;;  %v673_v4 = vpop.permute.xlu2 %672 }
 0x1b8   :  { %v692_v54 = vsel %vm272_vm14, %v690_v53, %v663_v51  ;;  %v641_v12 = vpop.permute.xlu1 %640 }
 0x1b9   :  { %v694_v57 = vsel %vm275_vm15, %v692_v54, %v671_v50 }
 0x1ba   :  { %v696_v58 = vsel %vm278_vm1, %v694_v57, %v679_v55  ;;  %v826_v57 = vpop.f32.mrf.mxu2 }
 0x1bd   :  { %787 = vmatmul.f32.gmra.mxu1 %v696_v58 }
 0x1bf   :  { %v633_v35 = vpop.permute.xlu0 %632 }
 0x1c0   :  { %v685_v61 = vsel %vm172_vm2, %v611_v59, %v633_v35  ;;  %v665_v2 = vpop.permute.xlu1 %664 }
 0x1c1   :  { %v687_v62 = vsel %vm263_vm11, %v685_v61, %v641_v12 }
 0x1c2   :  { %v689_v0 = vsel %vm266_vm12, %v687_v62, %v649_v6 }
 0x1c7   :  { %v657_v63 = vpop.permute.xlu0 %656 }
 0x1c8   :  { %v691_v1 = vsel %vm269_vm13, %v689_v0, %v657_v63 }
 0x1c9   :  { %v693_v3 = vsel %vm272_vm14, %v691_v1, %v665_v2 }
 0x1ca   :  { %v695_v5 = vsel %vm275_vm15, %v693_v3, %v673_v4 }
 0x1cf   :  { %v681_v26 = vpop.permute.xlu0 %680 }
 0x1d0   :  { %v697_v52 = vsel %vm278_vm1, %v695_v5, %v681_v26 }
 0x1d1   :  { %700 = vst [vmem:[#allocation3 + $0x60] sm:$0x3] %v697_v52  ;;  %v991_v52 = vld [vmem:[%s2115_s4 + $0x78] sm:$0xff] }
 0x1d2   :  { %1030 = vmatpush.msra.mxu3 %v991_v52 }
 0x1d3   :  { %v773_v10 = vpop.f32.mrf.mxu1 }
 0x1d4   :  { %v774_v42 = vadd.f32 %v1844_v7, %v773_v10  ;;  %v1007_v10 = vld [vmem:[%s2115_s4 + $0xf8] sm:$0xff] }
 0x1d5   :  { %1050 = vmatpush.msrb.mxu2 %v1007_v10 }
 0x1d6   :  { %v812_v13 = vadd.f32 %v811_v9, %v774_v42  ;;  %v990_v42 = vld [vmem:[%s2115_s4 + $0x70] sm:$0xff] }
 0x1d7   :  { %1031 = vmatpush.msra.mxu3 %v990_v42 }
 0x1d8   :  { %v714_v60 = vld [vmem:[#allocation3 + $0x60] sm:$0x3]  ;;  %v832_v14 = vmax.f32 %v812_v13, 0.0 }
 0x1d9   :  { %790 = vmatmul.f32.gmra.mxu1 %v714_v60  ;;  %v988_v60 = vld [vmem:[%s2115_s4 + $0x60] sm:$0xff] }
 0x1da   :  { %839 = vst.msk [vmem:[#allocation4] sm:$0xff] %vm172_vm2, %v832_v14  ;;  %v1006_v14 = vld [vmem:[%s2115_s4 + $0xf0] sm:$0xff] }
 0x1db   :  { %1051 = vmatpush.msrb.mxu2 %v1006_v14 }
 0x1e1   :  { %v849_v19 = vld [vmem:[#allocation4 + $0x6] sm:$0x3]  ;;  %v848_v20 = vld [vmem:[#allocation4 + $0x4] sm:$0x3]  ;;  %v847_v33 = vld [vmem:[#allocation4 + $0x2] sm:$0x3] }
 0x1e8   :  { %v776_v45 = vpop.f32.mrf.mxu1 }
 0x1e9   :  { %v777_v32 = vadd.f32 %v1844_v7, %v776_v45  ;;  %v1005_v45 = vld [vmem:[%s2115_s4 + $0xe8] sm:$0xff] }
 0x1ea   :  { %1052 = vmatpush.msrb.mxu2 %v1005_v45 }
 0x1eb   :  { %v815_v56 = vadd.f32 %v814_v44, %v777_v32  ;;  %v987_v32 = vld [vmem:[%s2115_s4 + $0x58] sm:$0xff]  ;;  %v986_v44 = vld [vmem:[%s2115_s4 + $0x50] sm:$0xff] }
 0x1ed   :  { %v833_v11 = vmax.f32 %v815_v56, 0.0  ;;  %v1004_v56 = vld [vmem:[%s2115_s4 + $0xe0] sm:$0xff] }
 0x1ee   :  { %1053 = vmatpush.msrb.mxu2 %v1004_v56 }
 0x1ef   :  { %840 = vst.msk [vmem:[#allocation4 + $0x8] sm:$0xff] %vm172_vm2, %v833_v11  ;;  %v985_v11 = vld [vmem:[%s2115_s4 + $0x48] sm:$0xff] }
 0x1f6   :  { %v852_v39 = vld [vmem:[#allocation4 + $0xc] sm:$0x3]  ;;  %v851_v46 = vld [vmem:[#allocation4 + $0xa] sm:$0x3]  ;;  %v850_v48 = vld [vmem:[#allocation4 + $0x8] sm:$0x3] }
 0x1f7   :  { %v853_v59 = vld [vmem:[#allocation4 + $0xe] sm:$0x3] }
 0x20b   :  { %v779_v15 = vpop.f32.mrf.mxu1 }
 0x20c   :  { %v780_v40 = vadd.f32 %v1844_v7, %v779_v15  ;;  %v984_v15 = vld [vmem:[%s2115_s4 + $0x40] sm:$0xff] }
 0x20e   :  { %v818_v8 = vadd.f32 %v817_v17, %v780_v40  ;;  %v1003_v40 = vld [vmem:[%s2115_s4 + $0xd8] sm:$0xff] }
 0x20f   :  { %v983_v17 = vld [vmem:[%s2115_s4 + $0x38] sm:$0xff]  ;;  %1054 = vmatpush.msrb.mxu2 %v1003_v40 }
 0x210   :  { %v834_v18 = vmax.f32 %v818_v8, 0.0  ;;  %v1002_v8 = vld [vmem:[%s2115_s4 + $0xd0] sm:$0xff] }
 0x211   :  { %1055 = vmatpush.msrb.mxu2 %v1002_v8 }
 0x212   :  { %841 = vst.msk [vmem:[#allocation4 + $0x10] sm:$0xff] %vm172_vm2, %v834_v18  ;;  %v982_v18 = vld [vmem:[%s2115_s4 + $0x30] sm:$0xff] }
 0x217   :  { %v829_v26 = vpop.f32.mrf.mxu2 }
 0x219   :  { %v857_v21 = vld [vmem:[#allocation4 + $0x16] sm:$0x3]  ;;  %v856_v22 = vld [vmem:[#allocation4 + $0x14] sm:$0x3]  ;;  %v855_v23 = vld [vmem:[#allocation4 + $0x12] sm:$0x3] }
 0x21a   :  { %v1338_v24 = vpack.i.bf16 %v857_v21, %v849_v19  ;;  %v1333_v25 = vpack.i.bf16 %v856_v22, %v848_v20  ;;  %v1328_v27 = vpack.i.bf16 %v855_v23, %v847_v33  ;;  %v981_v19 = vld [vmem:[%s2115_s4 + $0x28] sm:$0xff]  ;;  %v980_v33 = vld [vmem:[%s2115_s4 + $0x20] sm:$0xff]  ;;  %v999_v22 = vld [vmem:[%s2115_s4 + $0xb8] sm:$0xff] }
 0x21b   :  { %v1001_v20 = vld [vmem:[%s2115_s4 + $0xc8] sm:$0xff]  ;;  %v1000_v21 = vld [vmem:[%s2115_s4 + $0xc0] sm:$0xff]  ;;  %v979_v23 = vld [vmem:[%s2115_s4 + $0x18] sm:$0xff] }
 0x21c   :  { %1339 = vrot.lane.b32.xlu0 %v1338_v24, %s1386_s24  ;;  %1334 = vrot.lane.b32.xlu2 %v1333_v25, %s1391_s11  ;;  %v978_v24 = vld [vmem:[%s2115_s4 + $0x10] sm:$0xff]  ;;  %v977_v25 = vld [vmem:[%s2115_s4 + $0x8] sm:$0xff] }
 0x21d   :  { %1329 = vrot.lane.b32.xlu1 %v1328_v27, %s1387_s2  ;;  %1056 = vmatpush.msrb.mxu2 %v1001_v20  ;;  %v998_v27 = vld [vmem:[%s2115_s4 + $0xb0] sm:$0xff] }
 0x21f   :  { %1057 = vmatpush.msrb.mxu2 %v1000_v21 }
 0x221   :  { %1058 = vmatpush.msrb.mxu2 %v999_v22 }
 0x223   :  { %1059 = vmatpush.msrb.mxu2 %v998_v27 }
 0x22a   :  { %v782_v28 = vpop.f32.mrf.mxu1 }
 0x22b   :  { %v783_v29 = vadd.f32 %v1844_v7, %v782_v28  ;;  %v997_v28 = vld [vmem:[%s2115_s4 + $0xa8] sm:$0xff] }
 0x22c   :  { %1060 = vmatpush.msrb.mxu2 %v997_v28 }
 0x22d   :  { %v821_v31 = vadd.f32 %v820_v30, %v783_v29  ;;  %v976_v29 = vld [vmem:[%s2115_s4] sm:$0xff]  ;;  %v1023_v30 = vld [vmem:[%s2115_s4 + $0x178] sm:$0xff] }
 0x22f   :  { %v835_v34 = vmax.f32 %v821_v31, 0.0  ;;  %v1022_v31 = vld [vmem:[%s2115_s4 + $0x170] sm:$0xff] }
 0x231   :  { %842 = vst.msk [vmem:[#allocation4 + $0x18] sm:$0xff] %vm172_vm2, %v835_v34  ;;  %v1021_v34 = vld [vmem:[%s2115_s4 + $0x168] sm:$0xff] }
 0x232   :  { %v785_v36 = vpop.f32.mrf.mxu1 }
 0x233   :  { %v786_v16 = vadd.f32 %v1844_v7, %v785_v36  ;;  %v1020_v36 = vld [vmem:[%s2115_s4 + $0x160] sm:$0xff] }
 0x235   :  { %v824_v38 = vadd.f32 %v823_v37, %v786_v16  ;;  %v996_v16 = vld [vmem:[%s2115_s4 + $0xa0] sm:$0xff]  ;;  %v1019_v37 = vld [vmem:[%s2115_s4 + $0x158] sm:$0xff] }
 0x236   :  { %1061 = vmatpush.msrb.mxu2 %v996_v16 }
 0x237   :  { %v836_v41 = vmax.f32 %v824_v38, 0.0  ;;  %v995_v38 = vld [vmem:[%s2115_s4 + $0x98] sm:$0xff] }
 0x238   :  { %v860_v47 = vld [vmem:[#allocation4 + $0x1c] sm:$0x3]  ;;  %v859_v49 = vld [vmem:[#allocation4 + $0x1a] sm:$0x3]  ;;  %v858_v43 = vld [vmem:[#allocation4 + $0x18] sm:$0x3]  ;;  %1062 = vmatpush.msrb.mxu2 %v995_v38 }
 0x239   :  { %843 = vst.msk [vmem:[#allocation4 + $0x20] sm:$0xff] %vm172_vm2, %v836_v41  ;;  %v1353_v50 = vpack.i.bf16 %v860_v47, %v852_v39  ;;  %v1348_v51 = vpack.i.bf16 %v859_v49, %v851_v46  ;;  %v1343_v53 = vpack.i.bf16 %v858_v43, %v850_v48  ;;  %v861_v12 = vld [vmem:[#allocation4 + $0x1e] sm:$0x3]  ;;  %v1017_v46 = vld [vmem:[%s2115_s4 + $0x148] sm:$0xff]  ;;  %v1016_v47 = vld [vmem:[%s2115_s4 + $0x140] sm:$0xff] }
 0x23a   :  { %v788_v54 = vpop.f32.mrf.mxu1  ;;  %v1358_v62 = vpack.i.bf16 %v861_v12, %v853_v59  ;;  %v1018_v39 = vld [vmem:[%s2115_s4 + $0x150] sm:$0xff]  ;;  %v993_v48 = vld [vmem:[%s2115_s4 + $0x88] sm:$0xff]  ;;  %v992_v49 = vld [vmem:[%s2115_s4 + $0x80] sm:$0xff] }
 0x23b   :  { %1354 = vrot.lane.b32.xlu0 %v1353_v50, %s1385_s23  ;;  %1349 = vrot.lane.b32.xlu2 %v1348_v51, %s1389_s26  ;;  %v789_v55 = vadd.f32 %v1844_v7, %v788_v54  ;;  %v994_v41 = vld [vmem:[%s2115_s4 + $0x90] sm:$0xff]  ;;  %v1015_v43 = vld [vmem:[%s2115_s4 + $0x138] sm:$0xff] }
 0x23c   :  { %1344 = vrot.lane.b32.xlu1 %v1343_v53, %s1390_s29  ;;  %1063 = vmatpush.msrb.mxu2 %v994_v41  ;;  %v1014_v50 = vld [vmem:[%s2115_s4 + $0x130] sm:$0xff]  ;;  %v1013_v51 = vld [vmem:[%s2115_s4 + $0x128] sm:$0xff]  ;;  %v1012_v54 = vld [vmem:[%s2115_s4 + $0x120] sm:$0xff] }
 0x23d   :  { %v827_v58 = vadd.f32 %v826_v57, %v789_v55  ;;  %v1025_v53 = vld [vmem:[%s2115_s4 + $0x188] sm:$0xff]  ;;  %v1024_v55 = vld [vmem:[%s2115_s4 + $0x180] sm:$0xff]  ;;  %v1011_v57 = vld [vmem:[%s2115_s4 + $0x118] sm:$0xff] }
 0x23e   :  { %1064 = vmatpush.msrb.mxu2 %v993_v48  ;;  %v1009_v59 = vld [vmem:[%s2115_s4 + $0x108] sm:$0xff] }
 0x23f   :  { %v837_v35 = vmax.f32 %v827_v58, 0.0 }
 0x240   :  { %v864_v61 = vld [vmem:[#allocation4 + $0x24] sm:$0x3]  ;;  %v863_v6 = vld [vmem:[#allocation4 + $0x22] sm:$0x3]  ;;  %v865_v1 = vld [vmem:[#allocation4 + $0x26] sm:$0x3]  ;;  %1065 = vmatpush.msrb.mxu2 %v992_v49 }
 0x241   :  { %844 = vst.msk [vmem:[#allocation4 + $0x28] sm:$0xff] %vm172_vm2, %v837_v35  ;;  %v1010_v35 = vld [vmem:[%s2115_s4 + $0x110] sm:$0xff]  ;;  %v862_v28 = vld [vmem:[#allocation4 + $0x20] sm:$0x3]  ;;  %v1365_v49 = vld [vmem:[%s2112_s8 + $0x2] ss:$0 sm:$0xff] }
 0x242   :  { %1104 = vmatpush.msra.mxu2 %v1025_v53 }
 0x243   :  { %946 = vrot.lane.b32.xlu0 %v864_v61, %s1391_s11  ;;  %942 = vrot.lane.b32.xlu2 %v863_v6, %s1387_s2 }
 0x244   :  { %1359 = vrot.lane.b32.xlu1 %v1358_v62, %s1388_s25  ;;  %1105 = vmatpush.msra.mxu2 %v1024_v55  ;;  %v1008_v62 = vld [vmem:[%s2115_s4 + $0x100] sm:$0xff] }
 0x248   :  { %v867_v63 = vld [vmem:[#allocation4 + $0x2a] sm:$0x3]  ;;  %v866_v0 = vld [vmem:[#allocation4 + $0x28] sm:$0x3]  ;;  %v869_v2 = vld [vmem:[#allocation4 + $0x2e] sm:$0x3] }
 0x249   :  { %v868_v3 = vld [vmem:[#allocation4 + $0x2c] sm:$0x3] }
 0x24b   :  { %958 = vrot.lane.b32.xlu0 %v867_v63, %s1389_s26  ;;  %954 = vrot.lane.b32.xlu2 %v866_v0, %s1390_s29 }
 0x24c   :  { %950 = vrot.lane.b32.xlu1 %v865_v1, %s1386_s24  ;;  %v854_v1 = vld [vmem:[#allocation4 + $0x10] sm:$0x3] }
 0x253   :  { %966 = vrot.lane.b32.xlu2 %v869_v2, %s1388_s25  ;;  %v846_v2 = vld [vmem:[#allocation4] sm:$0x3] }
 0x254   :  { %962 = vrot.lane.b32.xlu1 %v868_v3, %s1385_s23 }
 0x256   :  { %v791_v4 = vpop.f32.mrf.mxu1 }
 0x257   :  { %v792_v5 = vadd.f32 %v1844_v7, %v791_v4  ;;  %v989_v7 = vld [vmem:[%s2115_s4 + $0x68] sm:$0xff] }
 0x258   :  { %1032 = vmatpush.msra.mxu3 %v989_v7 }
 0x259   :  { %v830_v9 = vadd.f32 %v829_v26, %v792_v5 }
 0x25a   :  { %1033 = vmatpush.msra.mxu3 %v988_v60 }
 0x25b   :  { %v838_v13 = vmax.f32 %v830_v9, 0.0 }
 0x25c   :  { %1034 = vmatpush.msra.mxu3 %v987_v32 }
 0x25d   :  { %845 = vst.msk [vmem:[#allocation4 + $0x30] sm:$0x3] %vm185_vm3, %v838_v13 }
 0x25e   :  { %1035 = vmatpush.msra.mxu3 %v986_v44 }
 0x260   :  { %1036 = vmatpush.msra.mxu3 %v985_v11 }
 0x262   :  { %1037 = vmatpush.msra.mxu3 %v984_v15 }
 0x264   :  { %1038 = vmatpush.msra.mxu3 %v983_v17  ;;  %v870_v16 = vld [vmem:[#allocation4 + $0x30] sm:$0x3] }
 0x266   :  { %1039 = vmatpush.msra.mxu3 %v982_v18 }
 0x268   :  { %1040 = vmatpush.msra.mxu3 %v981_v19 }
 0x26a   :  { %1041 = vmatpush.msra.mxu3 %v980_v33 }
 0x26c   :  { %1042 = vmatpush.msra.mxu3 %v979_v23 }
 0x26e   :  { %1043 = vmatpush.msra.mxu3 %v978_v24 }
 0x270   :  { %1044 = vmatpush.msra.mxu3 %v977_v25 }
 0x272   :  { %1045 = vmatpush.msra.mxu3 %v976_v29 }
 0x274   :  { %1070 = vmatpush.msrb.mxu3 %v1023_v30 }
 0x276   :  { %1071 = vmatpush.msrb.mxu3 %v1022_v31  ;;  %v1335_v58 = vpop.permute.xlu2 %1334 }
 0x277   :  { %v1337_v26 = vunpack.i.h.bf16 %v1335_v58  ;;  %v1336_v5 = vunpack.i.l.bf16 %v1335_v58 }
 0x278   :  { %1072 = vmatpush.msrb.mxu3 %v1021_v34 }
 0x27a   :  { %1073 = vmatpush.msrb.mxu3 %v1020_v36 }
 0x27c   :  { %1074 = vmatpush.msrb.mxu3 %v1019_v37 }
 0x27e   :  { %1075 = vmatpush.msrb.mxu3 %v1018_v39 }
 0x280   :  { %1076 = vmatpush.msrb.mxu3 %v1017_v46 }
 0x282   :  { %1077 = vmatpush.msrb.mxu3 %v1016_v47 }
 0x284   :  { %1078 = vmatpush.msrb.mxu3 %v1015_v43 }
 0x286   :  { %1079 = vmatpush.msrb.mxu3 %v1014_v50 }
 0x288   :  { %1080 = vmatpush.msrb.mxu3 %v1013_v51 }
 0x28a   :  { %1081 = vmatpush.msrb.mxu3 %v1012_v54 }
 0x28c   :  { %1082 = vmatpush.msrb.mxu3 %v1011_v57 }
 0x28e   :  { %1083 = vmatpush.msrb.mxu3 %v1010_v35  ;;  %v1340_v63 = vpop.permute.xlu0 %1339 }
 0x28f   :  { %v1330_v12 = vpop.permute.xlu1 %1329  ;;  %v1342_v9 = vunpack.i.h.bf16 %v1340_v63  ;;  %v1341_v13 = vunpack.i.l.bf16 %v1340_v63 }
 0x290   :  { %v1332_v61 = vunpack.i.h.bf16 %v1330_v12  ;;  %v1331_v6 = vunpack.i.l.bf16 %v1330_v12  ;;  %1084 = vmatpush.msrb.mxu3 %v1009_v59  ;;  %v1392_v12 = vmov 32.0  }
 0x291   :  { %1371 = vrcp.f32 %v1392_v12 }
 0x292   :  { %1085 = vmatpush.msrb.mxu3 %v1008_v62  ;;  %v934_v3 = vsel %vm172_vm2, %v854_v1, %v1332_v61  ;;  %v927_v4 = vsel %vm172_vm2, %v846_v2, %v1331_v6 }
 0x293   :  { %v935_v52 = vsel %vm263_vm11, %v934_v3, %v1337_v26  ;;  %v928_v10 = vsel %vm263_vm11, %v927_v4, %v1336_v5  ;;  %v1148_v5 = vld [vmem:[%s2116_s5 + $0x18] sm:$0xff] }
 0x294   :  { %v929_v45 = vsel %vm266_vm12, %v928_v10, %v1341_v13  ;;  %v936_v32 = vsel %vm266_vm12, %v935_v52, %v1342_v9  ;;  %v1147_v52 = vld [vmem:[%s2116_s5 + $0x10] sm:$0xff]  ;;  %v1146_v10 = vld [vmem:[%s2116_s5 + $0x8] sm:$0xff]  ;;  %v1145_v13 = vld [vmem:[%s2116_s5] sm:$0xff] }
 0x295   :  { %v1350_v0 = vpop.permute.xlu2 %1349 }
 0x296   :  { %v1352_v11 = vunpack.i.h.bf16 %v1350_v0  ;;  %v1351_v15 = vunpack.i.l.bf16 %v1350_v0 }
 0x297   :  { %v1372_v59 = vpop.eup %1371 }
 0x298   :  { %v1115_v61 = vmul.f32 32.0, %v1372_v59 }
 0x29a   :  { %v1116_v6 = vsub.f32 1.0, %v1115_v61 }
 0x29c   :  { %v1117_v62 = vmul.f32 %v1372_v59, %v1116_v6 }
 0x29d   :  { %v943_v40 = vpop.permute.xlu2 %942 }
 0x29e   :  { %v969_v30 = vsel %vm172_vm2, %v862_v28, %v943_v40  ;;  %v1118_v63 = vadd.f32 %v1372_v59, %v1117_v62  ;;  %v1366_v40 = vld [vmem:[%s2112_s8 + $0x3] ss:$0 sm:$0xff] }
 0x2a5   :  { %v955_v29 = vpop.permute.xlu2 %954 }
 0x2ad   :  { %v1355_v14 = vpop.permute.xlu0 %1354  ;;  %v967_v46 = vpop.permute.xlu2 %966 }
 0x2ae   :  { %v1345_v42 = vpop.permute.xlu1 %1344  ;;  %v1357_v18 = vunpack.i.h.bf16 %v1355_v14  ;;  %v1356_v19 = vunpack.i.l.bf16 %v1355_v14  ;;  %v1176_v14 = vld [vmem:[%s2117_s6 + $0x10] sm:$0xff] }
 0x2af   :  { %v1347_v7 = vunpack.i.h.bf16 %v1345_v42  ;;  %v1346_v60 = vunpack.i.l.bf16 %v1345_v42 }
 0x2b1   :  { %v930_v44 = vsel %vm269_vm13, %v929_v45, %v1346_v60  ;;  %v937_v56 = vsel %vm269_vm13, %v936_v32, %v1347_v7  ;;  %v1177_v60 = vld [vmem:[%s2117_s6 + $0x18] sm:$0xff] }
 0x2b2   :  { %v931_v17 = vsel %vm272_vm14, %v930_v44, %v1351_v15  ;;  %v938_v8 = vsel %vm272_vm14, %v937_v56, %v1352_v11 }
 0x2b3   :  { %v932_v22 = vsel %vm275_vm15, %v931_v17, %v1356_v19  ;;  %v939_v23 = vsel %vm275_vm15, %v938_v8, %v1357_v18  ;;  %v1367_v8 = vld [vmem:[%s2112_s8 + $0x4] ss:$0 sm:$0xff] }
 0x2b5   :  { %v947_v27 = vpop.permute.xlu0 %946 }
 0x2b6   :  { %v1360_v20 = vpop.permute.xlu1 %1359  ;;  %v970_v34 = vsel %vm263_vm11, %v969_v30, %v947_v27  ;;  %v1204_v30 = vld [vmem:[%s2118_s7 + $0x8] sm:$0xff] }
 0x2b7   :  { %v1362_v33 = vunpack.i.h.bf16 %v1360_v20  ;;  %v1361_v21 = vunpack.i.l.bf16 %v1360_v20 }
 0x2b9   :  { %v933_v24 = vsel %vm278_vm1, %v932_v22, %v1361_v21  ;;  %v940_v25 = vsel %vm278_vm1, %v939_v23, %v1362_v33  ;;  %v1175_v21 = vld [vmem:[%s2117_s6 + $0x8] sm:$0xff]  ;;  %v1174_v22 = vld [vmem:[%s2117_s6] sm:$0xff]  ;;  %v1206_v23 = vld [vmem:[%s2118_s7 + $0x18] sm:$0xff] }
 0x2ba   :  { %1046 = vmatmul.f32.vlgmr.msra.gmra.mxu3 %v933_v24  ;;  %1066 = vmatmul.f32.vlgmr.msrb.gmra.mxu2 %v940_v25  ;;  %v1205_v24 = vld [vmem:[%s2118_s7 + $0x10] sm:$0xff]  ;;  %v1368_v25 = vld [vmem:[%s2112_s8 + $0x5] ss:$0 sm:$0xff] }
 0x2bb   :  { %1165 = vmatpush.msra.mxu3 %v1148_v5  ;;  %1194 = vmatpush.msrb.mxu2 %v1177_v60 }
 0x2bd   :  { %v959_v38 = vpop.permute.xlu0 %958  ;;  %1166 = vmatpush.msra.mxu3 %v1147_v52  ;;  %1195 = vmatpush.msrb.mxu2 %v1176_v14 }
 0x2be   :  { %v951_v31 = vpop.permute.xlu1 %950 }
 0x2bf   :  { %v971_v36 = vsel %vm266_vm12, %v970_v34, %v951_v31  ;;  %1167 = vmatpush.msra.mxu3 %v1146_v10  ;;  %1196 = vmatpush.msrb.mxu2 %v1175_v21  ;;  %v1203_v31 = vld [vmem:[%s2118_s7] sm:$0xff]  ;;  %s1393_s7 = smov 124  }
 0x2c0   :  { %v972_v37 = vsel %vm269_vm13, %v971_v36, %v955_v29  ;;  %v1369_v34 = vld [vmem:[%s2112_s8 + $0x6] ss:$0 sm:$0xff] }
 0x2c1   :  { %v973_v39 = vsel %vm272_vm14, %v972_v37, %v959_v38  ;;  %1168 = vmatpush.msra.mxu3 %v1145_v13  ;;  %1197 = vmatpush.msrb.mxu2 %v1174_v22  ;;  %v1370_v38 = vld [vmem:[%s2112_s8 + $0x7] ss:$0 sm:$0xff]  ;;  %s1394_s8 = smov 4  }
 0x2c2   :  { %1308 = vmatmul.msk.f32.vlgmr.msra.gmra.mxu2 %vm172_vm2, %v870_v16  ;;  %vm1119_vm2 = vweird.f32 %v1372_v59 }
 0x2c3   :  { %v1120_v0 = vsel %vm1119_vm2, %v1372_v59, %v1118_v63 }
 0x2c6   :  { %v963_v41 = vpop.permute.xlu1 %962 }
 0x2c7   :  { %v974_v48 = vsel %vm275_vm15, %v973_v39, %v963_v41 }
 0x2c8   :  { %v975_v47 = vsel %vm278_vm1, %v974_v48, %v967_v46 }
 0x2c9   :  { %1086 = vmatmul.f32.vlgmr.msrb.gmra.mxu3 %v975_v47 }
 0x2ca   :  { %1223 = vmatpush.msrb.mxu3 %v1206_v23 }
 0x2cc   :  { %1224 = vmatpush.msrb.mxu3 %v1205_v24 }
 0x2ce   :  { %1225 = vmatpush.msrb.mxu3 %v1204_v30 }
 0x2d0   :  { %1226 = vmatpush.msrb.mxu3 %v1203_v31 }
 0x33d   :  { %v1047_v43 = vpop.f32.mrf.mxu3  ;;  %v1067_v50 = vpop.f32.mrf.mxu2 }
 0x33e   :  { %v1048_v51 = vadd.f32 %v1365_v49, %v1047_v43 }
 0x340   :  { %v1068_v53 = vadd.f32 %v1067_v50, %v1048_v51  ;;  %v1237_v51 = vld [vmem:[%s2119_s1] sm:$0x3] }
 0x345   :  { %v1107_v57 = vpop.f32.mrf.mxu2 }
 0x34c   :  { %v1087_v54 = vpop.f32.mrf.mxu3 }
 0x34d   :  { %v1088_v55 = vadd.f32 %v1087_v54, %v1068_v53 }
 0x34f   :  { %v1108_v58 = vadd.f32 %v1107_v57, %v1088_v55  ;;  %v1244_v55 = vmul.f32 -0.5, %v1237_v51 }
 0x351   :  { %v1111_v35 = vsel %vm1110_vm0, %v1108_v58, 0.0 }
 0x352   :  { %1112 = vadd.xlane.f32.xlu0 %v1111_v35 }
 0x3c5   :  { %v1113_v1 = vpop.xlane.xlu0 %1112 }
 0x3c6   :  { %v1121_v2 = vmul.f32 %v1120_v0, %v1113_v1 }
 0x3c8   :  { %v1122_v3 = vsub.f32 %v1108_v58, %v1121_v2  ;;  %v1245_v58 = vmul.f32 %v1244_v55, %v1237_v51 }
 0x3ca   :  { %v1123_v4 = vmul.f32 %v1122_v3, %v1122_v3 }
 0x3cc   :  { %v1124_v26 = vsel %vm1110_vm0, %v1123_v4, 0.0 }
 0x3cd   :  { %1125 = vadd.xlane.f32.xlu1 %v1124_v26 }
 0x440   :  { %v1126_v42 = vpop.xlane.xlu1 %1125 }
 0x441   :  { %v1127_v9 = vmul.f32 %v1126_v42, %v1120_v0 }
 0x443   :  { %v1128_v7 = vadd.f32 1e-05, %v1127_v9 }
 0x445   :  { %1373 = vrsqrt.f32 %v1128_v7  ;;  %vm1135_vm4 = vweird.f32 %v1128_v7 }
 0x44b   :  { %v1374_v45 = vpop.eup %1373 }
 0x44c   :  { %v1130_v32 = vmul.f32 %v1374_v45, %v1128_v7  ;;  %vm1136_vm3 = vweird.f32 %v1374_v45 }
 0x44d   :  { %vm1137_vm5 = vmor %vm1135_vm4, %vm1136_vm3 }
 0x44e   :  { %v1131_v44 = vmul.f32 %v1374_v45, %v1130_v32 }
 0x450   :  { %v1132_v56 = vmul.f32 0.5, %v1131_v44 }
 0x452   :  { %v1133_v11 = vsub.f32 1.5, %v1132_v56 }
 0x454   :  { %v1134_v15 = vmul.f32 %v1374_v45, %v1133_v11 }
 0x456   :  { %v1138_v17 = vsel %vm1137_vm5, %v1374_v45, %v1134_v15 }
 0x457   :  { %v1139_v18 = vmul.f32 %v1138_v17, %v1122_v3 }
 0x459   :  { %v1141_v19 = vmul.f32 %v1366_v40, %v1139_v18 }
 0x45b   :  { %v1143_v20 = vadd.f32 %v1367_v8, %v1141_v19 }
 0x45d   :  { %1375 = vtanh.f32 %v1143_v20 }
 0x463   :  { %v1376_v33 = vpop.eup %1375 }
 0x464   :  { %1309 = vmatmul.msk.f32.vlgmr.msra.gmra.mxu3 %vm263_vm11, %v1376_v33 }
 0x4e7   :  { %v1170_v27 = vpop.f32.mrf.mxu3 }
 0x4e8   :  { %v1171_v28 = vadd.f32 %v1368_v25, %v1170_v27 }
 0x4ea   :  { %v1173_v29 = vmax.f32 %v1171_v28, 0.0 }
 0x4ec   :  { %1310 = vmatmul.msk.f32.vlgmr.msrb.gmra.mxu2 %vm263_vm11, %v1173_v29 }
 0x56f   :  { %v1199_v36 = vpop.f32.mrf.mxu2 }
 0x570   :  { %v1200_v16 = vadd.f32 %v1369_v34, %v1199_v36 }
 0x572   :  { %v1202_v37 = vmax.f32 %v1200_v16, 0.0 }
 0x574   :  { %1311 = vmatmul.msk.f32.vlgmr.msrb.gmra.mxu3 %vm263_vm11, %v1202_v37 }
 0x5f7   :  { %v1228_v39 = vpop.f32.mrf.mxu3 }
 0x5f8   :  { %v1229_v41 = vadd.f32 %v1370_v38, %v1228_v39 }
 0x5fa   :  { %1377 = vtanh.f32 %v1229_v41 }
 0x600   :  { %v1378_v46 = vpop.eup %1377 }
 0x601   :  { %v1232_v48 = vadd.f32 1.0, %v1378_v46 }
 0x603   :  { %v1233_v47 = vmul.f32 6.0, %v1232_v48 }
 0x605   :  { %v1234_v49 = vadd.f32 -10.0, %v1233_v47 }
 0x607   :  { %v1235_v43 = vmul.f32 1.442695, %v1234_v49 }
 0x609   :  { %1379 = vpow2.f32 %v1235_v43 }
 0x60f   :  { %v1380_v50 = vpop.eup %1379 }
 0x610   :  { %1239 = vrot.lane.b32.xlu2 %v1380_v50, %s1393_s7 }
 0x618   :  { %1247 = vrot.lane.b32.xlu2 %v1234_v49, %s1393_s7 }
 0x66a   :  { %v1240_v53 = vpop.permute.xlu2 %1239 }
 0x66b   :  { %v1242_v54 = vmul.f32 %v1240_v53, %v1237_v51 }
 0x66d   :  { %v1243_v57 = vadd.f32 %v1242_v54, %v1229_v41 }
 0x66f   :  { %1381 = vtanh.f32 %v1243_v57 }
 0x672   :  { %v1248_v35 = vpop.permute.xlu2 %1247 }
 0x673   :  { %v1250_v12 = vsub.f32 %v1245_v58, %v1248_v35 }
 0x675   :  { %v1382_v59 = vpop.eup %1381  ;;  %v1252_v61 = vsel %vm1251_vm6, %v1250_v12, 0.0 }
 0x676   :  { %1268 = vrot.lane.b32.xlu1 %v1382_v59, %s1394_s8  ;;  %1253 = vadd.xlane.f32.xlu2 %v1252_v61  ;;  %v1257_v6 = vmul.f32 %v1382_v59, %v1382_v59 }
 0x678   :  { %v1258_v62 = vsub.f32 1.0, %v1257_v6 }
 0x67a   :  { %v1259_v63 = vmax.f32 %v1258_v62, 0.0 }
 0x67c   :  { %v1260_v0 = vadd.f32 1e-06, %v1259_v63 }
 0x67e   :  { %1383 = vlog2.f32 %v1260_v0 }
 0x684   :  { %v1384_v1 = vpop.eup %1383 }
 0x685   :  { %v1262_v2 = vmul.f32 0.6931472, %v1384_v1 }
 0x687   :  { %v1263_v3 = vsel %vm1251_vm6, %v1262_v2, 0.0 }
 0x688   :  { %1264 = vadd.xlane.f32.xlu0 %v1263_v3 }
 0x69c   :  { %1271 = vrot.lane.b32.xlu0 %v1234_v49, %s1394_s8 }
 0x6e8   :  { %v1269_v5 = vpop.permute.xlu1 %1268 }
 0x6e9   :  { %v1254_v26 = vpop.xlane.xlu2 %1253  ;;  %v1275_v10 = vsel %vm1274_vm7, %v1378_v46, %v1269_v5 }
 0x6ea   :  { %v1312_v52 = vadd.f32 -3.675754, %v1254_v26 }
 0x6fb   :  { %v1265_v4 = vpop.xlane.xlu0 %1264 }
 0x6fc   :  { %v1266_v42 = vsub.f32 %v1312_v52, %v1265_v4 }
 0x70e   :  { %v1272_v9 = vpop.permute.xlu0 %1271 }
 0x70f   :  { %v1277_v13 = vsel %vm1276_vm8, %v1275_v10, %v1272_v9 }
 0x710   :  { %v1279_v7 = vsel %vm1278_vm9, %v1277_v13, %v1266_v42 }
 0x711   :  { %v1281_v60 = vsel %vm1280_vm10, %v1279_v7, 0.0 }
 0x712   :  { %1282 = vst [vmem:[%s2120_s9] sm:$0x3] %v1281_v60 }

</bundles_post_ra>
